<compile_context>
chip_gen: v6e
topology: v6e:2x2x1
jax: 0.10.0
libtpu: 0.0.40
codegen_flags: <defaults>
</compile_context>

<pallas_src>
import functools

import jax
import jax.numpy as jnp
from jax.experimental import pallas as pl
from jax.experimental.pallas import tpu as pltpu


def _pad128(n):
    return ((n + 127) // 128) * 128


# ----------------------------- Pallas kernels --------------------------------

def _chain_kernel(*refs, relu_flags, reshape_mid):
    """refs = (x, w0, b0, w1, b1, ..., out).  Chains h = [relu](h @ w_i + b_i).

    All operands live in VMEM; matmuls run on the MXU with f32 accumulation.
    `reshape_mid` (static) optionally flattens (B*Ho*Wo, C) -> (B, Ho*Wo*C)
    after the first layer (conv -> fc transition when spatial > 1x1)."""
    x_ref = refs[0]
    o_ref = refs[-1]
    params = refs[1:-1]
    h = x_ref[...]
    for li, apply_relu in enumerate(relu_flags):
        w = params[2 * li][...]
        b = params[2 * li + 1][...]
        h = jnp.dot(h, w, preferred_element_type=jnp.float32) + b
        if apply_relu:
            h = jnp.maximum(h, 0.0)
        if li == 0 and reshape_mid is not None:
            h = h.reshape(reshape_mid)
    o_ref[...] = h.astype(o_ref.dtype)


def matmul_chain(x, layers, relu_flags, *, reshape_mid=None, tile_m=256):
    """Chained (x @ W + b) [+ReLU] in a single pallas_call.

    layers: sequence of (W (K,N), b (1,N)) with N a multiple of 128.
    For large row counts (and no mid-chain reshape) the rows are tiled over a
    parallel grid axis so megacore chips (v7x) can split the work."""
    M, K = x.shape
    n_out = layers[-1][0].shape[1]
    out_rows = M if reshape_mid is None else reshape_mid[0]

    args = [x]
    for w, b in layers:
        args.extend((w, b))
    kernel = functools.partial(_chain_kernel,
                               relu_flags=tuple(relu_flags),
                               reshape_mid=reshape_mid)

    if reshape_mid is None and M >= 2 * tile_m and M % tile_m == 0:
        # Row-parallel grid (only worthwhile at real batch sizes).
        in_specs = [pl.BlockSpec((tile_m, K), lambda i: (i, 0))]
        for w, b in layers:
            in_specs.append(pl.BlockSpec(w.shape, lambda i: (0, 0)))
            in_specs.append(pl.BlockSpec(b.shape, lambda i: (0, 0)))
        return pl.pallas_call(
            kernel,
            out_shape=jax.ShapeDtypeStruct((M, n_out), jnp.float32),
            grid=(M // tile_m,),
            in_specs=in_specs,
            out_specs=pl.BlockSpec((tile_m, n_out), lambda i: (i, 0)),
            compiler_params=pltpu.CompilerParams(
                dimension_semantics=("parallel",)),
        )(*args)

    # Small shapes: single full-block invocation, everything in VMEM.
    vmem = pltpu.MemorySpace.VMEM
    return pl.pallas_call(
        kernel,
        out_shape=jax.ShapeDtypeStruct((out_rows, n_out), jnp.float32),
        in_specs=[pl.BlockSpec(memory_space=vmem) for _ in args],
        out_specs=pl.BlockSpec(memory_space=vmem),
    )(*args)


# ------------------------------ conv glue ------------------------------------

def _im2col_nhwc(x, k, s):
    """x: (B, H, W, C) -> (B*Ho*Wo, k*k*C); feature order (kh, kw, c)."""
    B, H, W, C = x.shape
    Ho = (H - k) // s + 1
    Wo = (W - k) // s + 1
    cols = []
    for i in range(k):
        for j in range(k):
            cols.append(x[:, i:i + s * (Ho - 1) + 1:s,
                          j:j + s * (Wo - 1) + 1:s, :])
    p = jnp.stack(cols, axis=3)                     # (B, Ho, Wo, k*k, C)
    return p.reshape(B * Ho * Wo, k * k * C), Ho, Wo


# --------------------------- encoder (JAX port) -------------------------------

STANDARD_CONV = (
    {'channel_num': 32, 'kernel_size': 8, 'stride': 4, 'padding': 0},
    {'channel_num': 64, 'kernel_size': 4, 'stride': 2, 'padding': 0},
    {'channel_num': 64, 'kernel_size': 3, 'stride': 1, 'padding': 0},
)


class RandomEncoder2D:
    """JAX/Pallas port of RandomEncoder_2D (static weights, no gradients)."""

    def __init__(self, x_dim=(3, 36, 36), conv_layers=None, fc_dim=64,
                 z_dim=(32,), key=jax.random.PRNGKey(42)):
        self.x_dim = tuple(x_dim)
        self.z_dim = tuple(z_dim)
        self.conv_layers = STANDARD_CONV if conv_layers is None else conv_layers

        # raw (PyTorch-layout) params for the pure-JAX reference
        self.conv_params_raw = []
        # kernel-ready params: flattened, transposed to (kh,kw,cin,cout) order,
        # channels zero-padded to multiples of 128 lanes.
        self.conv_mats = []            # (Wmat, b (1,Cout_pad), k, stride)

        prev_c, hx, hy = self.x_dim
        prev_c_pad = prev_c            # raw input channels stay unpadded
        for layer in self.conv_layers:
            cn, k, s, p = (layer['channel_num'], layer['kernel_size'],
                           layer['stride'], layer['padding'])
            # TODO(synk): only padding=0 implemented (all STANDARD_CONV layers use 0).
            assert p == 0
            key, kw, kb = jax.random.split(key, 3)
            fan_in = prev_c * k * k
            bound = 1.0 / (fan_in ** 0.5)
            w = jax.random.uniform(kw, (cn, prev_c, k, k), jnp.float32, -bound, bound)
            b = jax.random.uniform(kb, (cn,), jnp.float32, -bound, bound)
            self.conv_params_raw.append((w, b, s))

            cn_pad = _pad128(cn)
            wmat = jnp.transpose(w, (2, 3, 1, 0))           # (k, k, Cin, Cout)
            wmat = jnp.pad(wmat, ((0, 0), (0, 0),
                                  (0, prev_c_pad - prev_c), (0, cn_pad - cn)))
            wmat = wmat.reshape(k * k * prev_c_pad, cn_pad)
            bvec = jnp.pad(b, (0, cn_pad - cn)).reshape(1, cn_pad)
            self.conv_mats.append((wmat, bvec, k, s))

            prev_c, prev_c_pad = cn, cn_pad
            hx = (hx + 2 * p - k) // s + 1
            hy = (hy + 2 * p - k) // s + 1
            if hx <= 0 or hy <= 0 or prev_c <= 0:
                raise ValueError('Conv dimensions must be positive: '
                                 + str((prev_c, hx, hy)))

        flat = prev_c * hx * hy
        key, kw1, kb1, kw2, kb2 = jax.random.split(key, 5)
        b1 = 1.0 / (flat ** 0.5)
        fc1_w = jax.random.uniform(kw1, (flat, fc_dim), jnp.float32, -b1, b1)
        fc1_b = jax.random.uniform(kb1, (fc_dim,), jnp.float32, -b1, b1)
        b2 = 1.0 / (fc_dim ** 0.5)
        fc2_w = jax.random.uniform(kw2, (fc_dim, self.z_dim[0]), jnp.float32, -b2, b2)
        fc2_b = jax.random.uniform(kb2, (self.z_dim[0],), jnp.float32, -b2, b2)
        self.fc1_w_raw, self.fc1_b_raw = fc1_w, fc1_b
        self.fc2_w_raw, self.fc2_b_raw = fc2_w, fc2_b

        fc_pad = _pad128(fc_dim)
        z_pad = _pad128(self.z_dim[0])
        # Reorder fc1 rows from the torch NCHW flatten (c,h,w) to the NHWC
        # flatten (h,w,c_pad) produced by the kernels, then zero-pad widths.
        w1 = fc1_w.reshape(prev_c, hx, hy, fc_dim).transpose(1, 2, 0, 3)
        w1 = jnp.pad(w1, ((0, 0), (0, 0),
                          (0, prev_c_pad - prev_c), (0, fc_pad - fc_dim)))
        self.fc1_w = w1.reshape(hx * hy * prev_c_pad, fc_pad)
        self.fc1_b = jnp.pad(fc1_b, (0, fc_pad - fc_dim)).reshape(1, fc_pad)
        self.fc2_w = jnp.pad(fc2_w, ((0, fc_pad - fc_dim),
                                     (0, z_pad - self.z_dim[0])))
        self.fc2_b = jnp.pad(fc2_b, (0, z_pad - self.z_dim[0])).reshape(1, z_pad)

        # One executable per input rank: im2col glue + 3 pallas_calls fused by XLA.
        self._jit_forward = jax.jit(self._forward_impl)

    # -- shape handling (mirrors BaseEncoder.apply_tensor_constraints) --------
    def apply_tensor_constraints(self, x):
        nd = len(self.x_dim)
        if x.ndim == nd:
            x = x[None]                       # single example -> add batch dim
        elif x.ndim != nd + 1:
            raise ValueError('Encoder input tensor should be ' + str(nd) +
                             'D (single example) or ' + str(nd + 1) + 'D (batch).')
        assert tuple(x.shape[-nd:]) == self.x_dim
        return x

    # -- forward ---------------------------------------------------------------
    def _forward_impl(self, x):
        x = self.apply_tensor_constraints(x)
        B = x.shape[0]
        h = jnp.transpose(x, (0, 2, 3, 1)).astype(jnp.float32)   # NCHW -> NHWC once

        # All conv layers except the last: one fused matmul+bias+ReLU kernel each.
        for wmat, bvec, k, s in self.conv_mats[:-1]:
            cols, Ho, Wo = _im2col_nhwc(h, k, s)
            out = matmul_chain(cols, [(wmat, bvec)], (True,))
            h = out.reshape(B, Ho, Wo, wmat.shape[1])

        # Last conv + flatten + fc1 + fc2 fused into ONE pallas kernel.
        wmat, bvec, k, s = self.conv_mats[-1]
        cols, Ho, Wo = _im2col_nhwc(h, k, s)
        reshape_mid = None if Ho * Wo == 1 else (B, Ho * Wo * wmat.shape[1])
        z = matmul_chain(
            cols,
            [(wmat, bvec), (self.fc1_w, self.fc1_b), (self.fc2_w, self.fc2_b)],
            (True, True, False),
            reshape_mid=reshape_mid)
        return z[:, : self.z_dim[0]]           # drop lane padding -> (B, z_dim)

    def forward(self, x):
        return self._jit_forward(x)


# pure-JAX reference for verification (no Pallas, raw/unpadded weights)
def _reference_forward(enc, x):
    x = enc.apply_tensor_constraints(x)
    for w, b, s in enc.conv_params_raw:
        x = jax.lax.conv_general_dilated(
            x, w, (s, s), 'VALID',
            dimension_numbers=('NCHW', 'OIHW', 'NCHW'))
        x = jax.nn.relu(x + b[None, :, None, None])
    B = x.shape[0]
    x = x.reshape(B, -1)
    x = jax.nn.relu(x @ enc.fc1_w_raw + enc.fc1_b_raw)
    return x @ enc.fc2_w_raw + enc.fc2_b_raw


if __name__ == "__main__":
    # Small shapes consistent with the module: x_dim=(3, 36, 36) with the
    # STANDARD_CONV stack -> 32x8x8 -> 64x3x3 -> 64x1x1 -> fc(64) -> z(32).
    batch = 2
    x_dim = (3, 36, 36)
    enc = RandomEncoder2D(x_dim=x_dim, fc_dim=64, z_dim=(32,),
                          key=jax.random.PRNGKey(42))

    x = jax.random.normal(jax.random.PRNGKey(0), (batch,) + x_dim, jnp.float32)

    out = jax.block_until_ready(enc.forward(x))
    assert out.shape == (batch, 32), out.shape

    ref = jax.block_until_ready(_reference_forward(enc, x))
    assert jnp.allclose(out, ref, rtol=1e-4, atol=1e-4), \
        float(jnp.max(jnp.abs(out - ref)))

    print("KERNEL_OK")
</pallas_src>

<mosaic_0001>
module attributes {stable_mosaic.version = 11 : i64} {
  func.func @_chain_kernel(%arg0: memref<128x192xf32, #tpu.memory_space<vmem>>, %arg1: memref<192x128xf32, #tpu.memory_space<vmem>>, %arg2: memref<1x128xf32, #tpu.memory_space<vmem>>, %arg3: memref<128x128xf32, #tpu.memory_space<vmem>>) attributes {dimension_semantics = [], scalar_prefetch = 0 : i64, scratch_operands = 0 : i64, tpu.core_type = #tpu.core_type<tc>} {
    %c0 = arith.constant 0 : index
    %c0_0 = arith.constant 0 : index
    %0 = vector.load %arg0[%c0, %c0_0] : memref<128x192xf32, #tpu.memory_space<vmem>>, vector<128x192xf32>
    %c0_1 = arith.constant 0 : index
    %c0_2 = arith.constant 0 : index
    %1 = vector.load %arg1[%c0_1, %c0_2] : memref<192x128xf32, #tpu.memory_space<vmem>>, vector<192x128xf32>
    %c0_3 = arith.constant 0 : index
    %c0_4 = arith.constant 0 : index
    %2 = vector.load %arg2[%c0_3, %c0_4] : memref<1x128xf32, #tpu.memory_space<vmem>>, vector<1x128xf32>
    %cst = arith.constant dense<0.000000e+00> : vector<128x128xf32>
    %3 = tpu.matmul %0, %1, %cst {dimension_numbers = #tpu.dot_dimension_numbers<[1], [0], [0], [1], [0, 0, 1, 1], [], []>} : vector<128x192xf32>, vector<192x128xf32>, vector<128x128xf32> -> vector<128x128xf32>
    %4 = vector.broadcast %2 : vector<1x128xf32> to vector<128x128xf32>
    %5 = arith.addf %3, %4 : vector<128x128xf32>
    %cst_5 = arith.constant 0.000000e+00 : f32
    %6 = vector.broadcast %cst_5 : f32 to vector<128x128xf32>
    %7 = arith.maximumf %5, %6 : vector<128x128xf32>
    %c0_6 = arith.constant 0 : index
    %c0_7 = arith.constant 0 : index
    %8 = vector.load %arg3[%c0_6, %c0_7] : memref<128x128xf32, #tpu.memory_space<vmem>>, vector<128x128xf32>
    tpu.vector_store %arg3[%c0_6, %c0_7], %7 {strides = array<i32>} : memref<128x128xf32, #tpu.memory_space<vmem>>, vector<128x128xf32>,
    return
  }
}

module attributes {stable_mosaic.version = 11 : i64} {
  func.func @_chain_kernel(%arg0: memref<18x2048xf32, #tpu.memory_space<vmem>>, %arg1: memref<2048x128xf32, #tpu.memory_space<vmem>>, %arg2: memref<1x128xf32, #tpu.memory_space<vmem>>, %arg3: memref<18x128xf32, #tpu.memory_space<vmem>>) attributes {dimension_semantics = [], scalar_prefetch = 0 : i64, scratch_operands = 0 : i64, tpu.core_type = #tpu.core_type<tc>} {
    %c0 = arith.constant 0 : index
    %c0_0 = arith.constant 0 : index
    %0 = vector.load %arg0[%c0, %c0_0] : memref<18x2048xf32, #tpu.memory_space<vmem>>, vector<18x2048xf32>
    %c0_1 = arith.constant 0 : index
    %c0_2 = arith.constant 0 : index
    %1 = vector.load %arg1[%c0_1, %c0_2] : memref<2048x128xf32, #tpu.memory_space<vmem>>, vector<2048x128xf32>
    %c0_3 = arith.constant 0 : index
    %c0_4 = arith.constant 0 : index
    %2 = vector.load %arg2[%c0_3, %c0_4] : memref<1x128xf32, #tpu.memory_space<vmem>>, vector<1x128xf32>
    %cst = arith.constant dense<0.000000e+00> : vector<18x128xf32>
    %3 = tpu.matmul %0, %1, %cst {dimension_numbers = #tpu.dot_dimension_numbers<[1], [0], [0], [1], [0, 0, 1, 1], [], []>} : vector<18x2048xf32>, vector<2048x128xf32>, vector<18x128xf32> -> vector<18x128xf32>
    %4 = vector.broadcast %2 : vector<1x128xf32> to vector<18x128xf32>
    %5 = arith.addf %3, %4 : vector<18x128xf32>
    %cst_5 = arith.constant 0.000000e+00 : f32
    %6 = vector.broadcast %cst_5 : f32 to vector<18x128xf32>
    %7 = arith.maximumf %5, %6 : vector<18x128xf32>
    %c0_6 = arith.constant 0 : index
    %c0_7 = arith.constant 0 : index
    %8 = vector.load %arg3[%c0_6, %c0_7] : memref<18x128xf32, #tpu.memory_space<vmem>>, vector<18x128xf32>
    tpu.vector_store %arg3[%c0_6, %c0_7], %7 {strides = array<i32>} : memref<18x128xf32, #tpu.memory_space<vmem>>, vector<18x128xf32>,
    return
  }
}

module attributes {stable_mosaic.version = 11 : i64} {
  func.func @_chain_kernel(%arg0: memref<2x1152xf32, #tpu.memory_space<vmem>>, %arg1: memref<1152x128xf32, #tpu.memory_space<vmem>>, %arg2: memref<1x128xf32, #tpu.memory_space<vmem>>, %arg3: memref<128x128xf32, #tpu.memory_space<vmem>>, %arg4: memref<1x128xf32, #tpu.memory_space<vmem>>, %arg5: memref<128x128xf32, #tpu.memory_space<vmem>>, %arg6: memref<1x128xf32, #tpu.memory_space<vmem>>, %arg7: memref<2x128xf32, #tpu.memory_space<vmem>>) attributes {dimension_semantics = [], scalar_prefetch = 0 : i64, scratch_operands = 0 : i64, tpu.core_type = #tpu.core_type<tc>} {
    %c0 = arith.constant 0 : index
    %c0_0 = arith.constant 0 : index
    %0 = vector.load %arg0[%c0, %c0_0] : memref<2x1152xf32, #tpu.memory_space<vmem>>, vector<2x1152xf32>
    %c0_1 = arith.constant 0 : index
    %c0_2 = arith.constant 0 : index
    %1 = vector.load %arg1[%c0_1, %c0_2] : memref<1152x128xf32, #tpu.memory_space<vmem>>, vector<1152x128xf32>
    %c0_3 = arith.constant 0 : index
    %c0_4 = arith.constant 0 : index
    %2 = vector.load %arg2[%c0_3, %c0_4] : memref<1x128xf32, #tpu.memory_space<vmem>>, vector<1x128xf32>
    %cst = arith.constant dense<0.000000e+00> : vector<2x128xf32>
    %3 = tpu.matmul %0, %1, %cst {dimension_numbers = #tpu.dot_dimension_numbers<[1], [0], [0], [1], [0, 0, 1, 1], [], []>} : vector<2x1152xf32>, vector<1152x128xf32>, vector<2x128xf32> -> vector<2x128xf32>
    %4 = vector.broadcast %2 : vector<1x128xf32> to vector<2x128xf32>
    %5 = arith.addf %3, %4 : vector<2x128xf32>
    %cst_5 = arith.constant 0.000000e+00 : f32
    %6 = vector.broadcast %cst_5 : f32 to vector<2x128xf32>
    %7 = arith.maximumf %5, %6 : vector<2x128xf32>
    %c0_6 = arith.constant 0 : index
    %c0_7 = arith.constant 0 : index
    %8 = vector.load %arg3[%c0_6, %c0_7] : memref<128x128xf32, #tpu.memory_space<vmem>>, vector<128x128xf32>
    %c0_8 = arith.constant 0 : index
    %c0_9 = arith.constant 0 : index
    %9 = vector.load %arg4[%c0_8, %c0_9] : memref<1x128xf32, #tpu.memory_space<vmem>>, vector<1x128xf32>
    %cst_10 = arith.constant dense<0.000000e+00> : vector<2x128xf32>
    %10 = tpu.matmul %7, %8, %cst_10 {dimension_numbers = #tpu.dot_dimension_numbers<[1], [0], [0], [1], [0, 0, 1, 1], [], []>} : vector<2x128xf32>, vector<128x128xf32>, vector<2x128xf32> -> vector<2x128xf32>
    %11 = vector.broadcast %9 : vector<1x128xf32> to vector<2x128xf32>
    %12 = arith.addf %10, %11 : vector<2x128xf32>
    %cst_11 = arith.constant 0.000000e+00 : f32
    %13 = vector.broadcast %cst_11 : f32 to vector<2x128xf32>
    %14 = arith.maximumf %12, %13 : vector<2x128xf32>
    %c0_12 = arith.constant 0 : index
    %c0_13 = arith.constant 0 : index
    %15 = vector.load %arg5[%c0_12, %c0_13] : memref<128x128xf32, #tpu.memory_space<vmem>>, vector<128x128xf32>
    %c0_14 = arith.constant 0 : index
    %c0_15 = arith.constant 0 : index
    %16 = vector.load %arg6[%c0_14, %c0_15] : memref<1x128xf32, #tpu.memory_space<vmem>>, vector<1x128xf32>
    %cst_16 = arith.constant dense<0.000000e+00> : vector<2x128xf32>
    %17 = tpu.matmul %14, %15, %cst_16 {dimension_numbers = #tpu.dot_dimension_numbers<[1], [0], [0], [1], [0, 0, 1, 1], [], []>} : vector<2x128xf32>, vector<128x128xf32>, vector<2x128xf32> -> vector<2x128xf32>
    %18 = vector.broadcast %16 : vector<1x128xf32> to vector<2x128xf32>
    %19 = arith.addf %17, %18 : vector<2x128xf32>
    %c0_17 = arith.constant 0 : index
    %c0_18 = arith.constant 0 : index
    %20 = vector.load %arg7[%c0_17, %c0_18] : memref<2x128xf32, #tpu.memory_space<vmem>>, vector<2x128xf32>
    tpu.vector_store %arg7[%c0_17, %c0_18], %19 {strides = array<i32>} : memref<2x128xf32, #tpu.memory_space<vmem>>, vector<2x128xf32>,
    return
  }
}

</mosaic_0001>

<bundles_post_ra>
// kernel: _forward_impl.3
= control target key start
LH: loop header
LB: loop body
LE: loop exit
PB: predicated region body
PF: predicated region fallthrough
CT: control target
= control target key end

     0   :  { %v373_v0 = vmov 0.0   ;;  %vm77_vm0 = vcmask 523264   ;;  %s695_s1 = inlined_call_operand.vmem [shape: f32[192,128], index: 1, kind: input, shape index: {}]   ;;  %s696_s0 = inlined_call_operand.vmem [shape: f32[128,192], index: 0, kind: input, shape index: {}]   ;;  %s697_s2 = inlined_call_operand.vmem [shape: f32[1,128], index: 2, kind: input, shape index: {}]   ;;  %s698_s3 = inlined_call_operand.vmem [shape: f32[128,128], index: 3, kind: output, shape index: {}]  }
   0x1   :  { %126 = vmatprep.subr.mxu0 %v373_v0  ;;  %324 = vmatprep.subr.mxu1 %v373_v0  ;;  %v61_v1 = vld [vmem:[%s695_s1 + $0x78] sm:$0xff]  ;;  %v60_v2 = vld [vmem:[%s695_s1 + $0x70] sm:$0xff]  ;;  %v59_v3 = vld [vmem:[%s695_s1 + $0x68] sm:$0xff] }
   0x2   :  { %127 = vmatpush1.msra.mxu0 %v61_v1  ;;  %348 = vmatpush1.msra.mxu1 %v61_v1  ;;  %v58_v4 = vld [vmem:[%s695_s1 + $0x60] sm:$0xff]  ;;  %v57_v5 = vld [vmem:[%s695_s1 + $0x58] sm:$0xff]  ;;  %v56_v6 = vld [vmem:[%s695_s1 + $0x50] sm:$0xff] }
   0x3   :  { %128 = vmatprep.subr.mxu0 %v373_v0  ;;  %325 = vmatprep.subr.mxu1 %v373_v0  ;;  %v55_v7 = vld [vmem:[%s695_s1 + $0x48] sm:$0xff]  ;;  %v54_v8 = vld [vmem:[%s695_s1 + $0x40] sm:$0xff]  ;;  %v53_v9 = vld [vmem:[%s695_s1 + $0x38] sm:$0xff] }
   0x4   :  { %129 = vmatpush1.msra.mxu0 %v60_v2  ;;  %349 = vmatpush1.msra.mxu1 %v60_v2  ;;  %v52_v10 = vld [vmem:[%s695_s1 + $0x30] sm:$0xff]  ;;  %v51_v11 = vld [vmem:[%s695_s1 + $0x28] sm:$0xff]  ;;  %v50_v12 = vld [vmem:[%s695_s1 + $0x20] sm:$0xff] }
   0x5   :  { %130 = vmatprep.subr.mxu0 %v373_v0  ;;  %326 = vmatprep.subr.mxu1 %v373_v0  ;;  %v49_v13 = vld [vmem:[%s695_s1 + $0x18] sm:$0xff]  ;;  %v48_v14 = vld [vmem:[%s695_s1 + $0x10] sm:$0xff]  ;;  %v47_v15 = vld [vmem:[%s695_s1 + $0x8] sm:$0xff] }
   0x6   :  { %131 = vmatpush1.msra.mxu0 %v59_v3  ;;  %350 = vmatpush1.msra.mxu1 %v59_v3  ;;  %v46_v16 = vld [vmem:[%s695_s1] sm:$0xff]  ;;  %v69_v17 = vld [vmem:[%s695_s1 + $0xb8] sm:$0xff]  ;;  %v68_v18 = vld [vmem:[%s695_s1 + $0xb0] sm:$0xff] }
   0x7   :  { %132 = vmatprep.subr.mxu0 %v373_v0  ;;  %327 = vmatprep.subr.mxu1 %v373_v0  ;;  %v67_v19 = vld [vmem:[%s695_s1 + $0xa8] sm:$0xff]  ;;  %v66_v20 = vld [vmem:[%s695_s1 + $0xa0] sm:$0xff]  ;;  %v65_v21 = vld [vmem:[%s695_s1 + $0x98] sm:$0xff] }
   0x8   :  { %133 = vmatpush1.msra.mxu0 %v58_v4  ;;  %351 = vmatpush1.msra.mxu1 %v58_v4  ;;  %v64_v22 = vld [vmem:[%s695_s1 + $0x90] sm:$0xff]  ;;  %v63_v23 = vld [vmem:[%s695_s1 + $0x88] sm:$0xff]  ;;  %v62_v24 = vld [vmem:[%s695_s1 + $0x80] sm:$0xff] }
   0x9   :  { %134 = vmatprep.subr.mxu0 %v373_v0  ;;  %328 = vmatprep.subr.mxu1 %v373_v0  ;;  %v15_v25 = vld [vmem:[%s696_s0 + $0x8] sm:$0xff]  ;;  %v14_v27 = vld [vmem:[%s696_s0] sm:$0xff]  ;;  %v17_v29 = vld [vmem:[%s696_s0 + $0x18] sm:$0xff] }
   0xa   :  { %135 = vmatpush1.msra.mxu0 %v57_v5  ;;  %352 = vmatpush1.msra.mxu1 %v57_v5  ;;  %v31_v26 = vld [vmem:[%s696_s0 + $0x88] sm:$0xff]  ;;  %v30_v28 = vld [vmem:[%s696_s0 + $0x80] sm:$0xff]  ;;  %v33_v30 = vld [vmem:[%s696_s0 + $0x98] sm:$0xff] }
   0xb   :  { %136 = vmatprep.subr.mxu0 %v373_v0  ;;  %329 = vmatprep.subr.mxu1 %v373_v0  ;;  %v16_v31 = vld [vmem:[%s696_s0 + $0x10] sm:$0xff]  ;;  %v19_v33 = vld [vmem:[%s696_s0 + $0x28] sm:$0xff]  ;;  %v18_v35 = vld [vmem:[%s696_s0 + $0x20] sm:$0xff] }
   0xc   :  { %137 = vmatpush1.msra.mxu0 %v56_v6  ;;  %353 = vmatpush1.msra.mxu1 %v56_v6  ;;  %v32_v32 = vld [vmem:[%s696_s0 + $0x90] sm:$0xff]  ;;  %v35_v34 = vld [vmem:[%s696_s0 + $0xa8] sm:$0xff]  ;;  %v34_v36 = vld [vmem:[%s696_s0 + $0xa0] sm:$0xff] }
   0xd   :  { %138 = vmatprep.subr.mxu0 %v373_v0  ;;  %330 = vmatprep.subr.mxu1 %v373_v0  ;;  %v21_v37 = vld [vmem:[%s696_s0 + $0x38] sm:$0xff]  ;;  %v20_v39 = vld [vmem:[%s696_s0 + $0x30] sm:$0xff]  ;;  %v23_v41 = vld [vmem:[%s696_s0 + $0x48] sm:$0xff] }
   0xe   :  { %139 = vmatpush1.msra.mxu0 %v55_v7  ;;  %354 = vmatpush1.msra.mxu1 %v55_v7  ;;  %v37_v38 = vld [vmem:[%s696_s0 + $0xb8] sm:$0xff]  ;;  %v36_v40 = vld [vmem:[%s696_s0 + $0xb0] sm:$0xff]  ;;  %v39_v42 = vld [vmem:[%s696_s0 + $0xc8] sm:$0xff] }
   0xf   :  { %140 = vmatprep.subr.mxu0 %v373_v0  ;;  %331 = vmatprep.subr.mxu1 %v373_v0  ;;  %v22_v43 = vld [vmem:[%s696_s0 + $0x40] sm:$0xff]  ;;  %v25_v45 = vld [vmem:[%s696_s0 + $0x58] sm:$0xff]  ;;  %v24_v47 = vld [vmem:[%s696_s0 + $0x50] sm:$0xff] }
  0x10   :  { %141 = vmatpush1.msra.mxu0 %v54_v8  ;;  %355 = vmatpush1.msra.mxu1 %v54_v8  ;;  %v38_v44 = vld [vmem:[%s696_s0 + $0xc0] sm:$0xff]  ;;  %v41_v46 = vld [vmem:[%s696_s0 + $0xd8] sm:$0xff]  ;;  %v40_v48 = vld [vmem:[%s696_s0 + $0xd0] sm:$0xff] }
  0x11   :  { %142 = vmatprep.subr.mxu0 %v373_v0  ;;  %332 = vmatprep.subr.mxu1 %v373_v0  ;;  %v27_v49 = vld [vmem:[%s696_s0 + $0x68] sm:$0xff]  ;;  %v26_v51 = vld [vmem:[%s696_s0 + $0x60] sm:$0xff]  ;;  %v29_v53 = vld [vmem:[%s696_s0 + $0x78] sm:$0xff] }
  0x12   :  { %143 = vmatpush1.msra.mxu0 %v53_v9  ;;  %356 = vmatpush1.msra.mxu1 %v53_v9  ;;  %v43_v50 = vld [vmem:[%s696_s0 + $0xe8] sm:$0xff]  ;;  %v42_v52 = vld [vmem:[%s696_s0 + $0xe0] sm:$0xff]  ;;  %v45_v54 = vld [vmem:[%s696_s0 + $0xf8] sm:$0xff] }
  0x13   :  { %144 = vmatprep.subr.mxu0 %v373_v0  ;;  %333 = vmatprep.subr.mxu1 %v373_v0  ;;  %v28_v55 = vld [vmem:[%s696_s0 + $0x70] sm:$0xff]  ;;  %v629_v57 = vld [vmem:[%s697_s2] ss:$0 sm:$0xff] }
  0x14   :  { %145 = vmatpush1.msra.mxu0 %v52_v10  ;;  %357 = vmatpush1.msra.mxu1 %v52_v10  ;;  %v44_v56 = vld [vmem:[%s696_s0 + $0xf0] sm:$0xff] }
  0x15   :  { %146 = vmatprep.subr.mxu0 %v373_v0  ;;  %334 = vmatprep.subr.mxu1 %v373_v0 }
  0x16   :  { %147 = vmatpush1.msra.mxu0 %v51_v11  ;;  %358 = vmatpush1.msra.mxu1 %v51_v11 }
  0x17   :  { %148 = vmatprep.subr.mxu0 %v373_v0  ;;  %335 = vmatprep.subr.mxu1 %v373_v0 }
  0x18   :  { %149 = vmatpush1.msra.mxu0 %v50_v12  ;;  %359 = vmatpush1.msra.mxu1 %v50_v12 }
  0x19   :  { %150 = vmatprep.subr.mxu0 %v373_v0  ;;  %336 = vmatprep.subr.mxu1 %v373_v0 }
  0x1a   :  { %151 = vmatpush1.msra.mxu0 %v49_v13  ;;  %360 = vmatpush1.msra.mxu1 %v49_v13 }
  0x1b   :  { %152 = vmatprep.subr.mxu0 %v373_v0  ;;  %337 = vmatprep.subr.mxu1 %v373_v0 }
  0x1c   :  { %153 = vmatpush1.msra.mxu0 %v48_v14  ;;  %361 = vmatpush1.msra.mxu1 %v48_v14 }
  0x1d   :  { %154 = vmatprep.subr.mxu0 %v373_v0  ;;  %338 = vmatprep.subr.mxu1 %v373_v0 }
  0x1e   :  { %155 = vmatpush1.msra.mxu0 %v47_v15  ;;  %362 = vmatpush1.msra.mxu1 %v47_v15 }
  0x1f   :  { %156 = vmatprep.subr.mxu0 %v373_v0  ;;  %339 = vmatprep.subr.mxu1 %v373_v0 }
  0x20   :  { %157 = vmatpush1.msra.mxu0 %v46_v16  ;;  %363 = vmatpush1.msra.mxu1 %v46_v16 }
  0x21   :  { %174 = vmatprep.subr.mxu0 %v373_v0  ;;  %340 = vmatprep.subr.mxu1 %v373_v0 }
  0x22   :  { %175 = vmatpush2.msra.mxu0 %v69_v17  ;;  %364 = vmatpush2.msra.mxu1 %v69_v17 }
  0x23   :  { %176 = vmatprep.subr.mxu0 %v373_v0  ;;  %341 = vmatprep.subr.mxu1 %v373_v0 }
  0x24   :  { %177 = vmatpush2.msra.mxu0 %v68_v18  ;;  %365 = vmatpush2.msra.mxu1 %v68_v18 }
  0x25   :  { %178 = vmatprep.subr.mxu0 %v373_v0  ;;  %342 = vmatprep.subr.mxu1 %v373_v0 }
  0x26   :  { %179 = vmatpush2.msra.mxu0 %v67_v19  ;;  %366 = vmatpush2.msra.mxu1 %v67_v19 }
  0x27   :  { %180 = vmatprep.subr.mxu0 %v373_v0  ;;  %343 = vmatprep.subr.mxu1 %v373_v0 }
  0x28   :  { %181 = vmatpush2.msra.mxu0 %v66_v20  ;;  %367 = vmatpush2.msra.mxu1 %v66_v20 }
  0x29   :  { %182 = vmatprep.subr.mxu0 %v373_v0  ;;  %344 = vmatprep.subr.mxu1 %v373_v0 }
  0x2a   :  { %183 = vmatpush2.msra.mxu0 %v65_v21  ;;  %368 = vmatpush2.msra.mxu1 %v65_v21 }
  0x2b   :  { %184 = vmatprep.subr.mxu0 %v373_v0  ;;  %345 = vmatprep.subr.mxu1 %v373_v0 }
  0x2c   :  { %185 = vmatpush2.msra.mxu0 %v64_v22  ;;  %369 = vmatpush2.msra.mxu1 %v64_v22 }
  0x2d   :  { %186 = vmatprep.subr.mxu0 %v373_v0  ;;  %346 = vmatprep.subr.mxu1 %v373_v0 }
  0x2e   :  { %187 = vmatpush2.msra.mxu0 %v63_v23  ;;  %370 = vmatpush2.msra.mxu1 %v63_v23 }
  0x2f   :  { %188 = vmatprep.subr.mxu0 %v373_v0  ;;  %347 = vmatprep.subr.mxu1 %v373_v0 }
  0x30   :  { %189 = vmatpush2.msra.mxu0 %v62_v24  ;;  %371 = vmatpush2.msra.mxu1 %v62_v24 }
  0x31   :  { %308 = vmatprep.mubr.msk.f32.mxu0 %vm77_vm0, %v15_v25  ;;  %316 = vmatprep.mubr.msk.f32.mxu1 %vm77_vm0, %v31_v26 }
  0x32   :  { %191 = vmatmul.mubr.f32.vlgmr.msra.gmra.mxu0 %v14_v27  ;;  %231 = vmatmul.mubr.f32.vlgmr.msra.gmra.mxu1 %v30_v28 }
  0x33   :  { %309 = vmatprep.mubr.msk.f32.mxu0 %vm77_vm0, %v17_v29  ;;  %317 = vmatprep.mubr.msk.f32.mxu1 %vm77_vm0, %v33_v30 }
  0x36   :  { %196 = vmatmul.mubr.f32.gmra.mxu0 %v16_v31  ;;  %236 = vmatmul.mubr.f32.gmra.mxu1 %v32_v32 }
  0x37   :  { %310 = vmatprep.mubr.msk.f32.mxu0 %vm77_vm0, %v19_v33  ;;  %318 = vmatprep.mubr.msk.f32.mxu1 %vm77_vm0, %v35_v34 }
  0x3a   :  { %201 = vmatmul.mubr.f32.gmra.mxu0 %v18_v35  ;;  %241 = vmatmul.mubr.f32.gmra.mxu1 %v34_v36 }
  0x3b   :  { %311 = vmatprep.mubr.msk.f32.mxu0 %vm77_vm0, %v21_v37  ;;  %319 = vmatprep.mubr.msk.f32.mxu1 %vm77_vm0, %v37_v38 }
  0x3e   :  { %206 = vmatmul.mubr.f32.gmra.mxu0 %v20_v39  ;;  %246 = vmatmul.mubr.f32.gmra.mxu1 %v36_v40 }
  0x3f   :  { %312 = vmatprep.mubr.msk.f32.mxu0 %vm77_vm0, %v23_v41  ;;  %320 = vmatprep.mubr.msk.f32.mxu1 %vm77_vm0, %v39_v42 }
  0x42   :  { %211 = vmatmul.mubr.f32.gmra.mxu0 %v22_v43  ;;  %251 = vmatmul.mubr.f32.gmra.mxu1 %v38_v44 }
  0x43   :  { %313 = vmatprep.mubr.msk.f32.mxu0 %vm77_vm0, %v25_v45  ;;  %321 = vmatprep.mubr.msk.f32.mxu1 %vm77_vm0, %v41_v46 }
  0x46   :  { %216 = vmatmul.mubr.f32.gmra.mxu0 %v24_v47  ;;  %256 = vmatmul.mubr.f32.gmra.mxu1 %v40_v48 }
  0x47   :  { %314 = vmatprep.mubr.msk.f32.mxu0 %vm77_vm0, %v27_v49  ;;  %322 = vmatprep.mubr.msk.f32.mxu1 %vm77_vm0, %v43_v50 }
  0x4a   :  { %221 = vmatmul.mubr.f32.gmra.mxu0 %v26_v51  ;;  %261 = vmatmul.mubr.f32.gmra.mxu1 %v42_v52 }
  0x4b   :  { %315 = vmatprep.mubr.msk.f32.mxu0 %vm77_vm0, %v29_v53  ;;  %323 = vmatprep.mubr.msk.f32.mxu1 %vm77_vm0, %v45_v54 }
  0x4e   :  { %226 = vmatmul.mubr.f32.gmra.mxu0 %v28_v55  ;;  %266 = vmatmul.mubr.f32.gmra.mxu1 %v44_v56 }
  0xf2   :  { %v192_v58 = vpop.f32.mrf.mxu0  ;;  %v232_v59 = vpop.f32.mrf.mxu1 }
  0xf3   :  { %v193_v60 = vadd.f32 %v629_v57, %v192_v58  ;;  %v233_v61 = vadd.f32 %v629_v57, %v232_v59 }
  0xf4   :  { %v194_v62 = vpop.f32.mrf.mxu0  ;;  %v234_v63 = vpop.f32.mrf.mxu1 }
  0xf5   :  { %v271_v0 = vmax.f32 %v193_v60, 0.0  ;;  %v279_v1 = vmax.f32 %v233_v61, 0.0 }
  0xf6   :  { %v197_v2 = vpop.f32.mrf.mxu0  ;;  %v237_v3 = vpop.f32.mrf.mxu1 }
  0xf7   :  { %287 = vst [vmem:[%s698_s3] sm:$0xff] %v271_v0  ;;  %295 = vst [vmem:[%s698_s3 + $0x40] sm:$0xff] %v279_v1  ;;  %v198_v4 = vadd.f32 %v629_v57, %v197_v2  ;;  %v238_v5 = vadd.f32 %v629_v57, %v237_v3 }
  0xf8   :  { %v199_v6 = vpop.f32.mrf.mxu0  ;;  %v239_v7 = vpop.f32.mrf.mxu1 }
  0xf9   :  { %v272_v8 = vmax.f32 %v198_v4, 0.0  ;;  %v280_v9 = vmax.f32 %v238_v5, 0.0 }
  0xfa   :  { %v202_v10 = vpop.f32.mrf.mxu0  ;;  %v242_v11 = vpop.f32.mrf.mxu1 }
  0xfb   :  { %288 = vst [vmem:[%s698_s3 + $0x8] sm:$0xff] %v272_v8  ;;  %296 = vst [vmem:[%s698_s3 + $0x48] sm:$0xff] %v280_v9  ;;  %v203_v12 = vadd.f32 %v629_v57, %v202_v10  ;;  %v243_v13 = vadd.f32 %v629_v57, %v242_v11 }
  0xfc   :  { %v204_v14 = vpop.f32.mrf.mxu0  ;;  %v244_v15 = vpop.f32.mrf.mxu1 }
  0xfd   :  { %v273_v16 = vmax.f32 %v203_v12, 0.0  ;;  %v281_v17 = vmax.f32 %v243_v13, 0.0 }
  0xfe   :  { %v207_v18 = vpop.f32.mrf.mxu0  ;;  %v247_v19 = vpop.f32.mrf.mxu1 }
  0xff   :  { %289 = vst [vmem:[%s698_s3 + $0x10] sm:$0xff] %v273_v16  ;;  %297 = vst [vmem:[%s698_s3 + $0x50] sm:$0xff] %v281_v17  ;;  %v208_v20 = vadd.f32 %v629_v57, %v207_v18  ;;  %v248_v21 = vadd.f32 %v629_v57, %v247_v19 }
 0x100   :  { %v209_v22 = vpop.f32.mrf.mxu0  ;;  %v249_v23 = vpop.f32.mrf.mxu1 }
 0x101   :  { %v274_v24 = vmax.f32 %v208_v20, 0.0  ;;  %v282_v25 = vmax.f32 %v248_v21, 0.0 }
 0x102   :  { %v212_v26 = vpop.f32.mrf.mxu0  ;;  %v252_v27 = vpop.f32.mrf.mxu1 }
 0x103   :  { %290 = vst [vmem:[%s698_s3 + $0x18] sm:$0xff] %v274_v24  ;;  %298 = vst [vmem:[%s698_s3 + $0x58] sm:$0xff] %v282_v25  ;;  %v213_v28 = vadd.f32 %v629_v57, %v212_v26  ;;  %v253_v29 = vadd.f32 %v629_v57, %v252_v27 }
 0x104   :  { %v214_v30 = vpop.f32.mrf.mxu0  ;;  %v254_v31 = vpop.f32.mrf.mxu1 }
 0x105   :  { %v275_v32 = vmax.f32 %v213_v28, 0.0  ;;  %v283_v33 = vmax.f32 %v253_v29, 0.0 }
 0x106   :  { %v217_v34 = vpop.f32.mrf.mxu0  ;;  %v257_v35 = vpop.f32.mrf.mxu1 }
 0x107   :  { %291 = vst [vmem:[%s698_s3 + $0x20] sm:$0xff] %v275_v32  ;;  %299 = vst [vmem:[%s698_s3 + $0x60] sm:$0xff] %v283_v33  ;;  %v218_v36 = vadd.f32 %v629_v57, %v217_v34  ;;  %v258_v37 = vadd.f32 %v629_v57, %v257_v35 }
 0x108   :  { %v219_v38 = vpop.f32.mrf.mxu0  ;;  %v259_v39 = vpop.f32.mrf.mxu1 }
 0x109   :  { %v276_v40 = vmax.f32 %v218_v36, 0.0  ;;  %v284_v41 = vmax.f32 %v258_v37, 0.0 }
 0x10a   :  { %v222_v42 = vpop.f32.mrf.mxu0  ;;  %v262_v43 = vpop.f32.mrf.mxu1 }
 0x10b   :  { %292 = vst [vmem:[%s698_s3 + $0x28] sm:$0xff] %v276_v40  ;;  %300 = vst [vmem:[%s698_s3 + $0x68] sm:$0xff] %v284_v41  ;;  %v223_v44 = vadd.f32 %v629_v57, %v222_v42  ;;  %v263_v45 = vadd.f32 %v629_v57, %v262_v43 }
 0x10c   :  { %v224_v46 = vpop.f32.mrf.mxu0  ;;  %v264_v47 = vpop.f32.mrf.mxu1 }
 0x10d   :  { %v277_v48 = vmax.f32 %v223_v44, 0.0  ;;  %v285_v49 = vmax.f32 %v263_v45, 0.0 }
 0x10e   :  { %v227_v50 = vpop.f32.mrf.mxu0  ;;  %v267_v51 = vpop.f32.mrf.mxu1 }
 0x10f   :  { %293 = vst [vmem:[%s698_s3 + $0x30] sm:$0xff] %v277_v48  ;;  %301 = vst [vmem:[%s698_s3 + $0x70] sm:$0xff] %v285_v49  ;;  %v228_v52 = vadd.f32 %v629_v57, %v227_v50  ;;  %v268_v53 = vadd.f32 %v629_v57, %v267_v51 }
 0x110   :  { %v229_v54 = vpop.f32.mrf.mxu0  ;;  %v269_v55 = vpop.f32.mrf.mxu1 }
 0x111   :  { %v278_v56 = vmax.f32 %v228_v52, 0.0  ;;  %v286_v58 = vmax.f32 %v268_v53, 0.0 }
 0x113   :  { %294 = vst [vmem:[%s698_s3 + $0x38] sm:$0xff] %v278_v56  ;;  %302 = vst [vmem:[%s698_s3 + $0x78] sm:$0xff] %v286_v58 }

// kernel: _forward_impl.4
= control target key start
LH: loop header
LB: loop body
LE: loop exit
PB: predicated region body
PF: predicated region fallthrough
CT: control target
= control target key end

     0   :  { %s2248_s1 = inlined_call_operand.vmem [shape: f32[2048,128], index: 1, kind: input, shape index: {}]   ;;  %s2249_s0 = inlined_call_operand.vmem [shape: f32[18,2048], index: 0, kind: input, shape index: {}]   ;;  %s2250_s2 = inlined_call_operand.vmem [shape: f32[1,128], index: 2, kind: input, shape index: {}]   ;;  %s2251_s3 = inlined_call_operand.vmem [shape: f32[18,128], index: 3, kind: output, shape index: {}]  }
   0x1   :  { %v93_v0 = vld [vmem:[%s2248_s1 + $0xf8] sm:$0xff]  ;;  %v92_v4 = vld [vmem:[%s2248_s1 + $0xf0] sm:$0xff]  ;;  %v91_v8 = vld [vmem:[%s2248_s1 + $0xe8] sm:$0xff] }
   0x2   :  { %v125_v1 = vld [vmem:[%s2248_s1 + $0x1f8] sm:$0xff]  ;;  %976 = vmatprep.subr.mxu0 %v93_v0  ;;  %v124_v5 = vld [vmem:[%s2248_s1 + $0x1f0] sm:$0xff]  ;;  %v123_v9 = vld [vmem:[%s2248_s1 + $0x1e8] sm:$0xff] }
   0x3   :  { %v77_v2 = vld [vmem:[%s2248_s1 + $0x78] sm:$0xff]  ;;  %1017 = vmatprep.subr.mxu1 %v125_v1  ;;  %v76_v6 = vld [vmem:[%s2248_s1 + $0x70] sm:$0xff]  ;;  %v75_v10 = vld [vmem:[%s2248_s1 + $0x68] sm:$0xff] }
   0x4   :  { %v109_v3 = vld [vmem:[%s2248_s1 + $0x178] sm:$0xff]  ;;  %977 = vmatpush3.msra.mxu0 %v77_v2  ;;  %v108_v7 = vld [vmem:[%s2248_s1 + $0x170] sm:$0xff]  ;;  %v107_v11 = vld [vmem:[%s2248_s1 + $0x168] sm:$0xff] }
   0x5   :  { %1018 = vmatpush3.msra.mxu1 %v109_v3  ;;  %978 = vmatprep.subr.mxu0 %v92_v4  ;;  %v90_v12 = vld [vmem:[%s2248_s1 + $0xe0] sm:$0xff]  ;;  %v89_v16 = vld [vmem:[%s2248_s1 + $0xd8] sm:$0xff]  ;;  %v88_v20 = vld [vmem:[%s2248_s1 + $0xd0] sm:$0xff] }
   0x6   :  { %1019 = vmatprep.subr.mxu1 %v124_v5  ;;  %979 = vmatpush3.msra.mxu0 %v76_v6  ;;  %v122_v13 = vld [vmem:[%s2248_s1 + $0x1e0] sm:$0xff]  ;;  %v121_v17 = vld [vmem:[%s2248_s1 + $0x1d8] sm:$0xff]  ;;  %v120_v21 = vld [vmem:[%s2248_s1 + $0x1d0] sm:$0xff] }
   0x7   :  { %1020 = vmatpush3.msra.mxu1 %v108_v7  ;;  %980 = vmatprep.subr.mxu0 %v91_v8  ;;  %v74_v14 = vld [vmem:[%s2248_s1 + $0x60] sm:$0xff]  ;;  %v73_v18 = vld [vmem:[%s2248_s1 + $0x58] sm:$0xff]  ;;  %v72_v22 = vld [vmem:[%s2248_s1 + $0x50] sm:$0xff] }
   0x8   :  { %1021 = vmatprep.subr.mxu1 %v123_v9  ;;  %v106_v15 = vld [vmem:[%s2248_s1 + $0x160] sm:$0xff]  ;;  %981 = vmatpush3.msra.mxu0 %v75_v10  ;;  %v105_v19 = vld [vmem:[%s2248_s1 + $0x158] sm:$0xff]  ;;  %v104_v23 = vld [vmem:[%s2248_s1 + $0x150] sm:$0xff] }
   0x9   :  { %1022 = vmatpush3.msra.mxu1 %v107_v11  ;;  %982 = vmatprep.subr.mxu0 %v90_v12  ;;  %v87_v24 = vld [vmem:[%s2248_s1 + $0xc8] sm:$0xff]  ;;  %v86_v28 = vld [vmem:[%s2248_s1 + $0xc0] sm:$0xff]  ;;  %v85_v32 = vld [vmem:[%s2248_s1 + $0xb8] sm:$0xff] }
   0xa   :  { %1023 = vmatprep.subr.mxu1 %v122_v13  ;;  %983 = vmatpush3.msra.mxu0 %v74_v14  ;;  %v119_v25 = vld [vmem:[%s2248_s1 + $0x1c8] sm:$0xff]  ;;  %v118_v29 = vld [vmem:[%s2248_s1 + $0x1c0] sm:$0xff]  ;;  %v117_v33 = vld [vmem:[%s2248_s1 + $0x1b8] sm:$0xff] }
   0xb   :  { %1024 = vmatpush3.msra.mxu1 %v106_v15  ;;  %984 = vmatprep.subr.mxu0 %v89_v16  ;;  %v71_v26 = vld [vmem:[%s2248_s1 + $0x48] sm:$0xff]  ;;  %v70_v30 = vld [vmem:[%s2248_s1 + $0x40] sm:$0xff]  ;;  %v69_v34 = vld [vmem:[%s2248_s1 + $0x38] sm:$0xff] }
   0xc   :  { %1025 = vmatprep.subr.mxu1 %v121_v17  ;;  %985 = vmatpush3.msra.mxu0 %v73_v18  ;;  %v103_v27 = vld [vmem:[%s2248_s1 + $0x148] sm:$0xff]  ;;  %v102_v31 = vld [vmem:[%s2248_s1 + $0x140] sm:$0xff]  ;;  %v101_v35 = vld [vmem:[%s2248_s1 + $0x138] sm:$0xff] }
   0xd   :  { %1026 = vmatpush3.msra.mxu1 %v105_v19  ;;  %986 = vmatprep.subr.mxu0 %v88_v20  ;;  %v84_v36 = vld [vmem:[%s2248_s1 + $0xb0] sm:$0xff]  ;;  %v83_v40 = vld [vmem:[%s2248_s1 + $0xa8] sm:$0xff]  ;;  %v82_v44 = vld [vmem:[%s2248_s1 + $0xa0] sm:$0xff] }
   0xe   :  { %1027 = vmatprep.subr.mxu1 %v120_v21  ;;  %987 = vmatpush3.msra.mxu0 %v72_v22  ;;  %v116_v37 = vld [vmem:[%s2248_s1 + $0x1b0] sm:$0xff]  ;;  %v115_v41 = vld [vmem:[%s2248_s1 + $0x1a8] sm:$0xff]  ;;  %v114_v45 = vld [vmem:[%s2248_s1 + $0x1a0] sm:$0xff] }
   0xf   :  { %1028 = vmatpush3.msra.mxu1 %v104_v23  ;;  %988 = vmatprep.subr.mxu0 %v87_v24  ;;  %v68_v38 = vld [vmem:[%s2248_s1 + $0x30] sm:$0xff]  ;;  %v67_v42 = vld [vmem:[%s2248_s1 + $0x28] sm:$0xff]  ;;  %v66_v46 = vld [vmem:[%s2248_s1 + $0x20] sm:$0xff] }
  0x10   :  { %1029 = vmatprep.subr.mxu1 %v119_v25  ;;  %989 = vmatpush3.msra.mxu0 %v71_v26  ;;  %v100_v39 = vld [vmem:[%s2248_s1 + $0x130] sm:$0xff]  ;;  %v99_v43 = vld [vmem:[%s2248_s1 + $0x128] sm:$0xff]  ;;  %v98_v47 = vld [vmem:[%s2248_s1 + $0x120] sm:$0xff] }
  0x11   :  { %1030 = vmatpush3.msra.mxu1 %v103_v27  ;;  %990 = vmatprep.subr.mxu0 %v86_v28  ;;  %v81_v48 = vld [vmem:[%s2248_s1 + $0x98] sm:$0xff]  ;;  %v80_v52 = vld [vmem:[%s2248_s1 + $0x90] sm:$0xff]  ;;  %v79_v56 = vld [vmem:[%s2248_s1 + $0x88] sm:$0xff] }
  0x12   :  { %1031 = vmatprep.subr.mxu1 %v118_v29  ;;  %991 = vmatpush3.msra.mxu0 %v70_v30  ;;  %v113_v49 = vld [vmem:[%s2248_s1 + $0x198] sm:$0xff]  ;;  %v112_v53 = vld [vmem:[%s2248_s1 + $0x190] sm:$0xff]  ;;  %v111_v57 = vld [vmem:[%s2248_s1 + $0x188] sm:$0xff] }
  0x13   :  { %1032 = vmatpush3.msra.mxu1 %v102_v31  ;;  %992 = vmatprep.subr.mxu0 %v85_v32  ;;  %v65_v50 = vld [vmem:[%s2248_s1 + $0x18] sm:$0xff]  ;;  %v64_v54 = vld [vmem:[%s2248_s1 + $0x10] sm:$0xff]  ;;  %v63_v58 = vld [vmem:[%s2248_s1 + $0x8] sm:$0xff] }
  0x14   :  { %1033 = vmatprep.subr.mxu1 %v117_v33  ;;  %993 = vmatpush3.msra.mxu0 %v69_v34  ;;  %v97_v51 = vld [vmem:[%s2248_s1 + $0x118] sm:$0xff]  ;;  %v96_v55 = vld [vmem:[%s2248_s1 + $0x110] sm:$0xff]  ;;  %v95_v59 = vld [vmem:[%s2248_s1 + $0x108] sm:$0xff] }
  0x15   :  { %1034 = vmatpush3.msra.mxu1 %v101_v35  ;;  %994 = vmatprep.subr.mxu0 %v84_v36  ;;  %v78_v60 = vld [vmem:[%s2248_s1 + $0x80] sm:$0xff]  ;;  %v15_v63 = vld [vmem:[%s2249_s0 + $0x8] sm:$0xff]  ;;  %v17_v2 = vld [vmem:[%s2249_s0 + $0x18] sm:$0xff] }
  0x16   :  { %1035 = vmatprep.subr.mxu1 %v116_v37  ;;  %995 = vmatpush3.msra.mxu0 %v68_v38  ;;  %v110_v61 = vld [vmem:[%s2248_s1 + $0x180] sm:$0xff]  ;;  %v157_v3 = vld [vmem:[%s2248_s1 + $0x2f8] sm:$0xff]  ;;  %v16_v5 = vld [vmem:[%s2249_s0 + $0x10] sm:$0xff] }
  0x17   :  { %1036 = vmatpush3.msra.mxu1 %v100_v39  ;;  %996 = vmatprep.subr.mxu0 %v83_v40  ;;  %v62_v62 = vld [vmem:[%s2248_s1] sm:$0xff]  ;;  %v189_v4 = vld [vmem:[%s2248_s1 + $0x3f8] sm:$0xff]  ;;  %v156_v8 = vld [vmem:[%s2248_s1 + $0x2f0] sm:$0xff] }
  0x18   :  { %1037 = vmatprep.subr.mxu1 %v115_v41  ;;  %997 = vmatpush3.msra.mxu0 %v67_v42  ;;  %v94_v0 = vld [vmem:[%s2248_s1 + $0x100] sm:$0xff]  ;;  %v141_v6 = vld [vmem:[%s2248_s1 + $0x278] sm:$0xff]  ;;  %v188_v9 = vld [vmem:[%s2248_s1 + $0x3f0] sm:$0xff] }
  0x19   :  { %1038 = vmatpush3.msra.mxu1 %v99_v43  ;;  %998 = vmatprep.subr.mxu0 %v82_v44  ;;  %v14_v1 = vld [vmem:[%s2249_s0] sm:$0xff]  ;;  %v173_v7 = vld [vmem:[%s2248_s1 + $0x378] sm:$0xff]  ;;  %v140_v10 = vld [vmem:[%s2248_s1 + $0x270] sm:$0xff] }
  0x1a   :  { %1039 = vmatprep.subr.mxu1 %v114_v45  ;;  %999 = vmatpush3.msra.mxu0 %v66_v46  ;;  %v172_v11 = vld [vmem:[%s2248_s1 + $0x370] sm:$0xff]  ;;  %v155_v12 = vld [vmem:[%s2248_s1 + $0x2e8] sm:$0xff]  ;;  %v154_v16 = vld [vmem:[%s2248_s1 + $0x2e0] sm:$0xff] }
  0x1b   :  { %1040 = vmatpush3.msra.mxu1 %v98_v47  ;;  %1000 = vmatprep.subr.mxu0 %v81_v48  ;;  %v187_v13 = vld [vmem:[%s2248_s1 + $0x3e8] sm:$0xff]  ;;  %v186_v17 = vld [vmem:[%s2248_s1 + $0x3e0] sm:$0xff]  ;;  %v153_v20 = vld [vmem:[%s2248_s1 + $0x2d8] sm:$0xff] }
  0x1c   :  { %1041 = vmatprep.subr.mxu1 %v113_v49  ;;  %1001 = vmatpush3.msra.mxu0 %v65_v50  ;;  %v139_v14 = vld [vmem:[%s2248_s1 + $0x268] sm:$0xff]  ;;  %v138_v18 = vld [vmem:[%s2248_s1 + $0x260] sm:$0xff]  ;;  %v185_v21 = vld [vmem:[%s2248_s1 + $0x3d8] sm:$0xff] }
  0x1d   :  { %1042 = vmatpush3.msra.mxu1 %v97_v51  ;;  %1002 = vmatprep.subr.mxu0 %v80_v52  ;;  %v171_v15 = vld [vmem:[%s2248_s1 + $0x368] sm:$0xff]  ;;  %v170_v19 = vld [vmem:[%s2248_s1 + $0x360] sm:$0xff]  ;;  %v137_v22 = vld [vmem:[%s2248_s1 + $0x258] sm:$0xff] }
  0x1e   :  { %1043 = vmatprep.subr.mxu1 %v112_v53  ;;  %1003 = vmatpush3.msra.mxu0 %v64_v54  ;;  %v169_v23 = vld [vmem:[%s2248_s1 + $0x358] sm:$0xff]  ;;  %v152_v24 = vld [vmem:[%s2248_s1 + $0x2d0] sm:$0xff]  ;;  %v151_v28 = vld [vmem:[%s2248_s1 + $0x2c8] sm:$0xff] }
  0x1f   :  { %1044 = vmatpush3.msra.mxu1 %v96_v55  ;;  %1004 = vmatprep.subr.mxu0 %v79_v56  ;;  %v184_v25 = vld [vmem:[%s2248_s1 + $0x3d0] sm:$0xff]  ;;  %v183_v29 = vld [vmem:[%s2248_s1 + $0x3c8] sm:$0xff]  ;;  %v150_v32 = vld [vmem:[%s2248_s1 + $0x2c0] sm:$0xff] }
  0x20   :  { %1045 = vmatprep.subr.mxu1 %v111_v57  ;;  %1005 = vmatpush3.msra.mxu0 %v63_v58  ;;  %v136_v26 = vld [vmem:[%s2248_s1 + $0x250] sm:$0xff]  ;;  %v135_v30 = vld [vmem:[%s2248_s1 + $0x248] sm:$0xff]  ;;  %v182_v33 = vld [vmem:[%s2248_s1 + $0x3c0] sm:$0xff] }
  0x21   :  { %1046 = vmatpush3.msra.mxu1 %v95_v59  ;;  %1006 = vmatprep.subr.mxu0 %v78_v60  ;;  %v168_v27 = vld [vmem:[%s2248_s1 + $0x350] sm:$0xff]  ;;  %v167_v31 = vld [vmem:[%s2248_s1 + $0x348] sm:$0xff]  ;;  %v134_v34 = vld [vmem:[%s2248_s1 + $0x240] sm:$0xff] }
  0x22   :  { %1047 = vmatprep.subr.mxu1 %v110_v61  ;;  %1007 = vmatpush3.msra.mxu0 %v62_v62  ;;  %v166_v35 = vld [vmem:[%s2248_s1 + $0x340] sm:$0xff]  ;;  %v149_v36 = vld [vmem:[%s2248_s1 + $0x2b8] sm:$0xff]  ;;  %v148_v40 = vld [vmem:[%s2248_s1 + $0x2b0] sm:$0xff] }
  0x23   :  { %389 = vmatprep.mubr.f32.mxu0 %v15_v63  ;;  %1048 = vmatpush3.msra.mxu1 %v94_v0  ;;  %v181_v37 = vld [vmem:[%s2248_s1 + $0x3b8] sm:$0xff]  ;;  %v180_v41 = vld [vmem:[%s2248_s1 + $0x3b0] sm:$0xff]  ;;  %v147_v44 = vld [vmem:[%s2248_s1 + $0x2a8] sm:$0xff] }
  0x24   :  { %390 = vmatmul.mubr.f32.vlgmr.msra.gmra.mxu0 %v14_v1  ;;  %469 = vmatprep.mubr.f32.mxu1 %v17_v2  ;;  %v133_v38 = vld [vmem:[%s2248_s1 + $0x238] sm:$0xff]  ;;  %v132_v42 = vld [vmem:[%s2248_s1 + $0x230] sm:$0xff]  ;;  %v179_v45 = vld [vmem:[%s2248_s1 + $0x3a8] sm:$0xff] }
  0x25   :  { %1058 = vmatprep.subr.mxu0 %v157_v3  ;;  %1099 = vmatprep.subr.mxu1 %v189_v4  ;;  %v165_v39 = vld [vmem:[%s2248_s1 + $0x338] sm:$0xff]  ;;  %v164_v43 = vld [vmem:[%s2248_s1 + $0x330] sm:$0xff]  ;;  %v131_v46 = vld [vmem:[%s2248_s1 + $0x228] sm:$0xff] }
  0x26   :  { %470 = vmatmul.mubr.f32.vlgmr.msra.gmra.mxu1 %v16_v5  ;;  %1059 = vmatpush3.msra.mxu0 %v141_v6  ;;  %v163_v47 = vld [vmem:[%s2248_s1 + $0x328] sm:$0xff]  ;;  %v146_v49 = vld [vmem:[%s2248_s1 + $0x2a0] sm:$0xff]  ;;  %v33_v54 = vld [vmem:[%s2249_s0 + $0x98] sm:$0xff] }
  0x27   :  { %1100 = vmatpush3.msra.mxu1 %v173_v7  ;;  %1060 = vmatprep.subr.mxu0 %v156_v8  ;;  %v31_v48 = vld [vmem:[%s2249_s0 + $0x88] sm:$0xff]  ;;  %v178_v50 = vld [vmem:[%s2248_s1 + $0x3a0] sm:$0xff]  ;;  %v145_v55 = vld [vmem:[%s2248_s1 + $0x298] sm:$0xff] }
  0x28   :  { %1101 = vmatprep.subr.mxu1 %v188_v9  ;;  %1061 = vmatpush3.msra.mxu0 %v140_v10  ;;  %v30_v51 = vld [vmem:[%s2249_s0 + $0x80] sm:$0xff]  ;;  %v177_v56 = vld [vmem:[%s2248_s1 + $0x398] sm:$0xff]  ;;  %v32_v57 = vld [vmem:[%s2249_s0 + $0x90] sm:$0xff] }
  0x29   :  { %1102 = vmatpush3.msra.mxu1 %v172_v11  ;;  %1062 = vmatprep.subr.mxu0 %v155_v12  ;;  %v130_v52 = vld [vmem:[%s2248_s1 + $0x220] sm:$0xff]  ;;  %v129_v58 = vld [vmem:[%s2248_s1 + $0x218] sm:$0xff]  ;;  %v47_v60 = vld [vmem:[%s2249_s0 + $0x108] sm:$0x3] }
  0x2a   :  { %1103 = vmatprep.subr.mxu1 %v187_v13  ;;  %1063 = vmatpush3.msra.mxu0 %v139_v14  ;;  %v162_v53 = vld [vmem:[%s2248_s1 + $0x320] sm:$0xff]  ;;  %v161_v59 = vld [vmem:[%s2248_s1 + $0x318] sm:$0xff]  ;;  %v144_v61 = vld [vmem:[%s2248_s1 + $0x290] sm:$0xff] }
  0x2b   :  { %1104 = vmatpush3.msra.mxu1 %v171_v15  ;;  %1064 = vmatprep.subr.mxu0 %v154_v16  ;;  %v176_v62 = vld [vmem:[%s2248_s1 + $0x390] sm:$0xff]  ;;  %v46_v63 = vld [vmem:[%s2249_s0 + $0x100] sm:$0x3]  ;;  %v49_v2 = vld [vmem:[%s2249_s0 + $0x118] sm:$0x3] }
  0x2c   :  { %1105 = vmatprep.subr.mxu1 %v186_v17  ;;  %1065 = vmatpush3.msra.mxu0 %v138_v18  ;;  %v128_v0 = vld [vmem:[%s2248_s1 + $0x210] sm:$0xff]  ;;  %v143_v3 = vld [vmem:[%s2248_s1 + $0x288] sm:$0xff]  ;;  %v142_v8 = vld [vmem:[%s2248_s1 + $0x280] sm:$0xff] }
  0x2d   :  { %1106 = vmatpush3.msra.mxu1 %v170_v19  ;;  %1066 = vmatprep.subr.mxu0 %v153_v20  ;;  %v160_v1 = vld [vmem:[%s2248_s1 + $0x310] sm:$0xff]  ;;  %v175_v4 = vld [vmem:[%s2248_s1 + $0x388] sm:$0xff]  ;;  %v174_v9 = vld [vmem:[%s2248_s1 + $0x380] sm:$0xff] }
  0x2e   :  { %1107 = vmatprep.subr.mxu1 %v185_v21  ;;  %1067 = vmatpush3.msra.mxu0 %v137_v22  ;;  %v48_v5 = vld [vmem:[%s2249_s0 + $0x110] sm:$0x3]  ;;  %v127_v6 = vld [vmem:[%s2248_s1 + $0x208] sm:$0xff]  ;;  %v126_v10 = vld [vmem:[%s2248_s1 + $0x200] sm:$0xff] }
  0x2f   :  { %1108 = vmatpush3.msra.mxu1 %v169_v23  ;;  %1068 = vmatprep.subr.mxu0 %v152_v24  ;;  %v159_v7 = vld [vmem:[%s2248_s1 + $0x308] sm:$0xff]  ;;  %v158_v12 = vld [vmem:[%s2248_s1 + $0x300] sm:$0xff]  ;;  %v21_v14 = vld [vmem:[%s2249_s0 + $0x38] sm:$0xff] }
  0x30   :  { %1109 = vmatprep.subr.mxu1 %v184_v25  ;;  %1069 = vmatpush3.msra.mxu0 %v136_v26  ;;  %v19_v11 = vld [vmem:[%s2249_s0 + $0x28] sm:$0xff]  ;;  %v18_v13 = vld [vmem:[%s2249_s0 + $0x20] sm:$0xff]  ;;  %v221_v15 = vld [vmem:[%s2248_s1 + $0x4f8] sm:$0xff] }
  0x31   :  { %1110 = vmatpush3.msra.mxu1 %v168_v27  ;;  %1070 = vmatprep.subr.mxu0 %v151_v28  ;;  %v253_v16 = vld [vmem:[%s2248_s1 + $0x5f8] sm:$0xff]  ;;  %v20_v17 = vld [vmem:[%s2249_s0 + $0x30] sm:$0xff]  ;;  %v35_v22 = vld [vmem:[%s2249_s0 + $0xa8] sm:$0xff] }
  0x32   :  { %1111 = vmatprep.subr.mxu1 %v183_v29  ;;  %1071 = vmatpush3.msra.mxu0 %v135_v30  ;;  %v205_v18 = vld [vmem:[%s2248_s1 + $0x478] sm:$0xff]  ;;  %v220_v20 = vld [vmem:[%s2248_s1 + $0x4f0] sm:$0xff]  ;;  %v34_v25 = vld [vmem:[%s2249_s0 + $0xa0] sm:$0xff] }
  0x33   :  { %1112 = vmatpush3.msra.mxu1 %v167_v31  ;;  %1072 = vmatprep.subr.mxu0 %v150_v32  ;;  %v237_v19 = vld [vmem:[%s2248_s1 + $0x578] sm:$0xff]  ;;  %v252_v21 = vld [vmem:[%s2248_s1 + $0x5f0] sm:$0xff]  ;;  %v219_v26 = vld [vmem:[%s2248_s1 + $0x4e8] sm:$0xff] }
  0x34   :  { %1113 = vmatprep.subr.mxu1 %v182_v33  ;;  %1073 = vmatpush3.msra.mxu0 %v134_v34  ;;  %v204_v23 = vld [vmem:[%s2248_s1 + $0x470] sm:$0xff]  ;;  %v251_v27 = vld [vmem:[%s2248_s1 + $0x5e8] sm:$0xff]  ;;  %v37_v28 = vld [vmem:[%s2249_s0 + $0xb8] sm:$0xff] }
  0x35   :  { %1114 = vmatpush3.msra.mxu1 %v166_v35  ;;  %1074 = vmatprep.subr.mxu0 %v149_v36  ;;  %v236_v24 = vld [vmem:[%s2248_s1 + $0x570] sm:$0xff]  ;;  %v203_v29 = vld [vmem:[%s2248_s1 + $0x468] sm:$0xff]  ;;  %v218_v31 = vld [vmem:[%s2248_s1 + $0x4e0] sm:$0xff] }
  0x36   :  { %1115 = vmatprep.subr.mxu1 %v181_v37  ;;  %1075 = vmatpush3.msra.mxu0 %v133_v38  ;;  %v235_v30 = vld [vmem:[%s2248_s1 + $0x568] sm:$0xff]  ;;  %v36_v32 = vld [vmem:[%s2249_s0 + $0xb0] sm:$0xff]  ;;  %v250_v33 = vld [vmem:[%s2248_s1 + $0x5e0] sm:$0xff] }
  0x37   :  { %1116 = vmatpush3.msra.mxu1 %v165_v39  ;;  %1076 = vmatprep.subr.mxu0 %v148_v40  ;;  %v51_v34 = vld [vmem:[%s2249_s0 + $0x128] sm:$0x3]  ;;  %v202_v35 = vld [vmem:[%s2248_s1 + $0x460] sm:$0xff]  ;;  %v217_v38 = vld [vmem:[%s2248_s1 + $0x4d8] sm:$0xff] }
  0x38   :  { %1117 = vmatprep.subr.mxu1 %v180_v41  ;;  %1077 = vmatpush3.msra.mxu0 %v132_v42  ;;  %v234_v36 = vld [vmem:[%s2248_s1 + $0x560] sm:$0xff]  ;;  %v249_v39 = vld [vmem:[%s2248_s1 + $0x5d8] sm:$0xff] }
  0x39   :  { %1118 = vmatpush3.msra.mxu1 %v164_v43  ;;  %1078 = vmatprep.subr.mxu0 %v147_v44  ;;  %v50_v37 = vld [vmem:[%s2249_s0 + $0x120] sm:$0x3]  ;;  %v53_v40 = vld [vmem:[%s2249_s0 + $0x138] sm:$0x3]  ;;  %v216_v43 = vld [vmem:[%s2248_s1 + $0x4d0] sm:$0xff] }
  0x3a   :  { %1119 = vmatprep.subr.mxu1 %v179_v45  ;;  %1079 = vmatpush3.msra.mxu0 %v131_v46  ;;  %v201_v41 = vld [vmem:[%s2248_s1 + $0x458] sm:$0xff]  ;;  %v52_v44 = vld [vmem:[%s2249_s0 + $0x130] sm:$0x3] }
  0x3b   :  { %1120 = vmatpush3.msra.mxu1 %v163_v47  ;;  %394 = vmatprep.mubr.f32.mxu0 %v31_v48  ;;  %v233_v42 = vld [vmem:[%s2248_s1 + $0x558] sm:$0xff]  ;;  %v248_v45 = vld [vmem:[%s2248_s1 + $0x5d0] sm:$0xff]  ;;  %v215_v48 = vld [vmem:[%s2248_s1 + $0x4c8] sm:$0xff] }
  0x3c   :  { %1080 = vmatprep.subr.mxu0 %v146_v49  ;;  %1121 = vmatprep.subr.mxu1 %v178_v50  ;;  %v200_v46 = vld [vmem:[%s2248_s1 + $0x450] sm:$0xff]  ;;  %v247_v49 = vld [vmem:[%s2248_s1 + $0x5c8] sm:$0xff] }
  0x3d   :  { %395 = vmatmul.mubr.f32.gmra.mxu0 %v30_v51  ;;  %1122 = vmatpush3.msra.mxu1 %v162_v53  ;;  %v232_v47 = vld [vmem:[%s2248_s1 + $0x550] sm:$0xff]  ;;  %v199_v50 = vld [vmem:[%s2248_s1 + $0x448] sm:$0xff]  ;;  %v246_v53 = vld [vmem:[%s2248_s1 + $0x5c0] sm:$0xff] }
  0x3e   :  { %1081 = vmatpush3.msra.mxu0 %v130_v52  ;;  %474 = vmatprep.mubr.f32.mxu1 %v33_v54  ;;  %v231_v51 = vld [vmem:[%s2248_s1 + $0x548] sm:$0xff]  ;;  %v214_v52 = vld [vmem:[%s2248_s1 + $0x4c0] sm:$0xff] }
  0x3f   :  { %1082 = vmatprep.subr.mxu0 %v145_v55  ;;  %1123 = vmatprep.subr.mxu1 %v177_v56  ;;  %v198_v54 = vld [vmem:[%s2248_s1 + $0x440] sm:$0xff]  ;;  %v213_v56 = vld [vmem:[%s2248_s1 + $0x4b8] sm:$0xff] }
  0x40   :  { %475 = vmatmul.mubr.f32.gmra.mxu1 %v32_v57  ;;  %1083 = vmatpush3.msra.mxu0 %v129_v58  ;;  %v230_v55 = vld [vmem:[%s2248_s1 + $0x540] sm:$0xff]  ;;  %v245_v57 = vld [vmem:[%s2248_s1 + $0x5b8] sm:$0xff] }
  0x41   :  { %1124 = vmatpush3.msra.mxu1 %v161_v59  ;;  %399 = vmatprep.mubr.f32.mxu0 %v47_v60  ;;  %v197_v58 = vld [vmem:[%s2248_s1 + $0x438] sm:$0xff]  ;;  %v212_v60 = vld [vmem:[%s2248_s1 + $0x4b0] sm:$0xff] }
  0x42   :  { %1084 = vmatprep.subr.mxu0 %v144_v61  ;;  %1125 = vmatprep.subr.mxu1 %v176_v62  ;;  %v229_v59 = vld [vmem:[%s2248_s1 + $0x538] sm:$0xff]  ;;  %v244_v61 = vld [vmem:[%s2248_s1 + $0x5b0] sm:$0xff] }
  0x43   :  { %400 = vmatmul.mubr.f32.gmra.mxu0 %v46_v63  ;;  %1126 = vmatpush3.msra.mxu1 %v160_v1  ;;  %v196_v62 = vld [vmem:[%s2248_s1 + $0x430] sm:$0xff]  ;;  %v243_v1 = vld [vmem:[%s2248_s1 + $0x5a8] sm:$0xff] }
  0x44   :  { %1085 = vmatpush3.msra.mxu0 %v128_v0  ;;  %479 = vmatprep.mubr.f32.mxu1 %v49_v2  ;;  %v228_v63 = vld [vmem:[%s2248_s1 + $0x530] sm:$0xff]  ;;  %v211_v0 = vld [vmem:[%s2248_s1 + $0x4a8] sm:$0xff] }
  0x45   :  { %1086 = vmatprep.subr.mxu0 %v143_v3  ;;  %1127 = vmatprep.subr.mxu1 %v175_v4  ;;  %v195_v2 = vld [vmem:[%s2248_s1 + $0x428] sm:$0xff]  ;;  %v210_v4 = vld [vmem:[%s2248_s1 + $0x4a0] sm:$0xff] }
  0x46   :  { %480 = vmatmul.mubr.f32.gmra.mxu1 %v48_v5  ;;  %1087 = vmatpush3.msra.mxu0 %v127_v6  ;;  %v227_v3 = vld [vmem:[%s2248_s1 + $0x528] sm:$0xff]  ;;  %v242_v5 = vld [vmem:[%s2248_s1 + $0x5a0] sm:$0xff] }
  0x47   :  { %1128 = vmatpush3.msra.mxu1 %v159_v7  ;;  %1088 = vmatprep.subr.mxu0 %v142_v8  ;;  %v194_v6 = vld [vmem:[%s2248_s1 + $0x420] sm:$0xff]  ;;  %v209_v8 = vld [vmem:[%s2248_s1 + $0x498] sm:$0xff] }
  0x48   :  { %1129 = vmatprep.subr.mxu1 %v174_v9  ;;  %1089 = vmatpush3.msra.mxu0 %v126_v10  ;;  %v226_v7 = vld [vmem:[%s2248_s1 + $0x520] sm:$0xff]  ;;  %v241_v9 = vld [vmem:[%s2248_s1 + $0x598] sm:$0xff] }
  0x49   :  { %549 = vmatprep.mubr.f32.mxu0 %v19_v11  ;;  %1130 = vmatpush3.msra.mxu1 %v158_v12  ;;  %v193_v10 = vld [vmem:[%s2248_s1 + $0x418] sm:$0xff]  ;;  %v208_v12 = vld [vmem:[%s2248_s1 + $0x490] sm:$0xff] }
  0x4a   :  { %550 = vmatmul.mubr.f32.vlgmr.msra.gmra.mxu0 %v18_v13  ;;  %629 = vmatprep.mubr.f32.mxu1 %v21_v14  ;;  %v225_v11 = vld [vmem:[%s2248_s1 + $0x518] sm:$0xff]  ;;  %v240_v13 = vld [vmem:[%s2248_s1 + $0x590] sm:$0xff] }
  0x4b   :  { %1140 = vmatprep.subr.mxu0 %v221_v15  ;;  %1181 = vmatprep.subr.mxu1 %v253_v16  ;;  %v192_v14 = vld [vmem:[%s2248_s1 + $0x410] sm:$0xff]  ;;  %v207_v16 = vld [vmem:[%s2248_s1 + $0x488] sm:$0xff] }
  0x4c   :  { %630 = vmatmul.mubr.f32.vlgmr.msra.gmra.mxu1 %v20_v17  ;;  %1141 = vmatpush3.msra.mxu0 %v205_v18  ;;  %v224_v15 = vld [vmem:[%s2248_s1 + $0x510] sm:$0xff]  ;;  %v239_v17 = vld [vmem:[%s2248_s1 + $0x588] sm:$0xff] }
  0x4d   :  { %1182 = vmatpush3.msra.mxu1 %v237_v19  ;;  %1142 = vmatprep.subr.mxu0 %v220_v20  ;;  %v191_v18 = vld [vmem:[%s2248_s1 + $0x408] sm:$0xff]  ;;  %v206_v20 = vld [vmem:[%s2248_s1 + $0x480] sm:$0xff] }
  0x4e   :  { %1183 = vmatprep.subr.mxu1 %v252_v21  ;;  %554 = vmatprep.mubr.f32.mxu0 %v35_v22  ;;  %v223_v19 = vld [vmem:[%s2248_s1 + $0x508] sm:$0xff]  ;;  %v238_v21 = vld [vmem:[%s2248_s1 + $0x580] sm:$0xff] }
  0x4f   :  { %1143 = vmatpush3.msra.mxu0 %v204_v23  ;;  %1184 = vmatpush3.msra.mxu1 %v236_v24  ;;  %v190_v22 = vld [vmem:[%s2248_s1 + $0x400] sm:$0xff]  ;;  %v23_v23 = vld [vmem:[%s2249_s0 + $0x48] sm:$0xff] }
  0x50   :  { %555 = vmatmul.mubr.f32.gmra.mxu0 %v34_v25  ;;  %1144 = vmatprep.subr.mxu0 %v219_v26  ;;  %v222_v24 = vld [vmem:[%s2248_s1 + $0x500] sm:$0xff]  ;;  %v25_v26 = vld [vmem:[%s2249_s0 + $0x58] sm:$0xff] }
  0x51   :  { %1185 = vmatprep.subr.mxu1 %v251_v27  ;;  %634 = vmatprep.mubr.f32.mxu1 %v37_v28  ;;  %v22_v25 = vld [vmem:[%s2249_s0 + $0x40] sm:$0xff]  ;;  %v285_v27 = vld [vmem:[%s2248_s1 + $0x6f8] sm:$0xff] }
  0x52   :  { %1145 = vmatpush3.msra.mxu0 %v203_v29  ;;  %1186 = vmatpush3.msra.mxu1 %v235_v30  ;;  %v317_v28 = vld [vmem:[%s2248_s1 + $0x7f8] sm:$0xff]  ;;  %v24_v29 = vld [vmem:[%s2249_s0 + $0x50] sm:$0xff] }
  0x53   :  { %1146 = vmatprep.subr.mxu0 %v218_v31  ;;  %635 = vmatmul.mubr.f32.gmra.mxu1 %v36_v32  ;;  %v269_v30 = vld [vmem:[%s2248_s1 + $0x678] sm:$0xff]  ;;  %v284_v32 = vld [vmem:[%s2248_s1 + $0x6f0] sm:$0xff] }
  0x54   :  { %1187 = vmatprep.subr.mxu1 %v250_v33  ;;  %559 = vmatprep.mubr.f32.mxu0 %v51_v34  ;;  %v301_v31 = vld [vmem:[%s2248_s1 + $0x778] sm:$0xff]  ;;  %v316_v33 = vld [vmem:[%s2248_s1 + $0x7f0] sm:$0xff]  ;;  %v39_v34 = vld [vmem:[%s2249_s0 + $0xc8] sm:$0xff] }
  0x55   :  { %1147 = vmatpush3.msra.mxu0 %v202_v35  ;;  %1188 = vmatpush3.msra.mxu1 %v234_v36  ;;  %v268_v35 = vld [vmem:[%s2248_s1 + $0x670] sm:$0xff] }
  0x56   :  { %560 = vmatmul.mubr.f32.gmra.mxu0 %v50_v37  ;;  %1148 = vmatprep.subr.mxu0 %v217_v38  ;;  %v300_v36 = vld [vmem:[%s2248_s1 + $0x770] sm:$0xff]  ;;  %v38_v37 = vld [vmem:[%s2249_s0 + $0xc0] sm:$0xff]  ;;  %v283_v38 = vld [vmem:[%s2248_s1 + $0x6e8] sm:$0xff] }
  0x57   :  { %1189 = vmatprep.subr.mxu1 %v249_v39  ;;  %639 = vmatprep.mubr.f32.mxu1 %v53_v40  ;;  %v315_v39 = vld [vmem:[%s2248_s1 + $0x7e8] sm:$0xff]  ;;  %v41_v40 = vld [vmem:[%s2249_s0 + $0xd8] sm:$0xff] }
  0x58   :  { %1149 = vmatpush3.msra.mxu0 %v201_v41  ;;  %1190 = vmatpush3.msra.mxu1 %v233_v42  ;;  %v267_v41 = vld [vmem:[%s2248_s1 + $0x668] sm:$0xff] }
  0x59   :  { %1150 = vmatprep.subr.mxu0 %v216_v43  ;;  %640 = vmatmul.mubr.f32.gmra.mxu1 %v52_v44  ;;  %v299_v42 = vld [vmem:[%s2248_s1 + $0x768] sm:$0xff]  ;;  %v282_v43 = vld [vmem:[%s2248_s1 + $0x6e0] sm:$0xff]  ;;  %v40_v44 = vld [vmem:[%s2249_s0 + $0xd0] sm:$0xff] }
  0x5a   :  { %1191 = vmatprep.subr.mxu1 %v248_v45  ;;  %1151 = vmatpush3.msra.mxu0 %v200_v46  ;;  %v314_v45 = vld [vmem:[%s2248_s1 + $0x7e0] sm:$0xff]  ;;  %v55_v46 = vld [vmem:[%s2249_s0 + $0x148] sm:$0x3] }
  0x5b   :  { %1192 = vmatpush3.msra.mxu1 %v232_v47  ;;  %1152 = vmatprep.subr.mxu0 %v215_v48  ;;  %v266_v47 = vld [vmem:[%s2248_s1 + $0x660] sm:$0xff] }
  0x5c   :  { %1193 = vmatprep.subr.mxu1 %v247_v49  ;;  %1153 = vmatpush3.msra.mxu0 %v199_v50  ;;  %v298_v48 = vld [vmem:[%s2248_s1 + $0x760] sm:$0xff]  ;;  %v281_v50 = vld [vmem:[%s2248_s1 + $0x6d8] sm:$0xff] }
  0x5d   :  { %1194 = vmatpush3.msra.mxu1 %v231_v51  ;;  %1154 = vmatprep.subr.mxu0 %v214_v52  ;;  %v54_v49 = vld [vmem:[%s2249_s0 + $0x140] sm:$0x3]  ;;  %v313_v51 = vld [vmem:[%s2248_s1 + $0x7d8] sm:$0xff] }
  0x5e   :  { %1195 = vmatprep.subr.mxu1 %v246_v53  ;;  %1155 = vmatpush3.msra.mxu0 %v198_v54  ;;  %v57_v52 = vld [vmem:[%s2249_s0 + $0x158] sm:$0x3] }
  0x5f   :  { %1196 = vmatpush3.msra.mxu1 %v230_v55  ;;  %1156 = vmatprep.subr.mxu0 %v213_v56  ;;  %v265_v53 = vld [vmem:[%s2248_s1 + $0x658] sm:$0xff]  ;;  %v280_v55 = vld [vmem:[%s2248_s1 + $0x6d0] sm:$0xff] }
  0x60   :  { %1197 = vmatprep.subr.mxu1 %v245_v57  ;;  %1157 = vmatpush3.msra.mxu0 %v197_v58  ;;  %v297_v54 = vld [vmem:[%s2248_s1 + $0x758] sm:$0xff]  ;;  %v56_v56 = vld [vmem:[%s2249_s0 + $0x150] sm:$0x3] }
  0x61   :  { %1198 = vmatpush3.msra.mxu1 %v229_v59  ;;  %1158 = vmatprep.subr.mxu0 %v212_v60  ;;  %v312_v57 = vld [vmem:[%s2248_s1 + $0x7d0] sm:$0xff]  ;;  %v279_v60 = vld [vmem:[%s2248_s1 + $0x6c8] sm:$0xff] }
  0x62   :  { %1199 = vmatprep.subr.mxu1 %v244_v61  ;;  %1159 = vmatpush3.msra.mxu0 %v196_v62  ;;  %v264_v58 = vld [vmem:[%s2248_s1 + $0x650] sm:$0xff]  ;;  %v311_v61 = vld [vmem:[%s2248_s1 + $0x7c8] sm:$0xff] }
  0x63   :  { %1200 = vmatpush3.msra.mxu1 %v228_v63  ;;  %1160 = vmatprep.subr.mxu0 %v211_v0  ;;  %v296_v59 = vld [vmem:[%s2248_s1 + $0x750] sm:$0xff]  ;;  %v263_v62 = vld [vmem:[%s2248_s1 + $0x648] sm:$0xff]  ;;  %v278_v0 = vld [vmem:[%s2248_s1 + $0x6c0] sm:$0xff] }
  0x64   :  { %1201 = vmatprep.subr.mxu1 %v243_v1  ;;  %1161 = vmatpush3.msra.mxu0 %v195_v2  ;;  %v295_v63 = vld [vmem:[%s2248_s1 + $0x748] sm:$0xff]  ;;  %v310_v1 = vld [vmem:[%s2248_s1 + $0x7c0] sm:$0xff] }
  0x65   :  { %1202 = vmatpush3.msra.mxu1 %v227_v3  ;;  %1162 = vmatprep.subr.mxu0 %v210_v4  ;;  %v262_v2 = vld [vmem:[%s2248_s1 + $0x640] sm:$0xff]  ;;  %v277_v4 = vld [vmem:[%s2248_s1 + $0x6b8] sm:$0xff] }
  0x66   :  { %1203 = vmatprep.subr.mxu1 %v242_v5  ;;  %1163 = vmatpush3.msra.mxu0 %v194_v6  ;;  %v294_v3 = vld [vmem:[%s2248_s1 + $0x740] sm:$0xff]  ;;  %v309_v5 = vld [vmem:[%s2248_s1 + $0x7b8] sm:$0xff] }
  0x67   :  { %1204 = vmatpush3.msra.mxu1 %v226_v7  ;;  %1164 = vmatprep.subr.mxu0 %v209_v8  ;;  %v261_v6 = vld [vmem:[%s2248_s1 + $0x638] sm:$0xff]  ;;  %v276_v8 = vld [vmem:[%s2248_s1 + $0x6b0] sm:$0xff] }
  0x68   :  { %1205 = vmatprep.subr.mxu1 %v241_v9  ;;  %1165 = vmatpush3.msra.mxu0 %v193_v10  ;;  %v293_v7 = vld [vmem:[%s2248_s1 + $0x738] sm:$0xff]  ;;  %v308_v9 = vld [vmem:[%s2248_s1 + $0x7b0] sm:$0xff] }
  0x69   :  { %1206 = vmatpush3.msra.mxu1 %v225_v11  ;;  %1166 = vmatprep.subr.mxu0 %v208_v12  ;;  %v260_v10 = vld [vmem:[%s2248_s1 + $0x630] sm:$0xff]  ;;  %v275_v12 = vld [vmem:[%s2248_s1 + $0x6a8] sm:$0xff] }
  0x6a   :  { %1207 = vmatprep.subr.mxu1 %v240_v13  ;;  %1167 = vmatpush3.msra.mxu0 %v192_v14  ;;  %v292_v11 = vld [vmem:[%s2248_s1 + $0x730] sm:$0xff]  ;;  %v307_v13 = vld [vmem:[%s2248_s1 + $0x7a8] sm:$0xff] }
  0x6b   :  { %1208 = vmatpush3.msra.mxu1 %v224_v15  ;;  %1168 = vmatprep.subr.mxu0 %v207_v16  ;;  %v259_v14 = vld [vmem:[%s2248_s1 + $0x628] sm:$0xff]  ;;  %v274_v16 = vld [vmem:[%s2248_s1 + $0x6a0] sm:$0xff] }
  0x6c   :  { %1209 = vmatprep.subr.mxu1 %v239_v17  ;;  %1169 = vmatpush3.msra.mxu0 %v191_v18  ;;  %v291_v15 = vld [vmem:[%s2248_s1 + $0x728] sm:$0xff]  ;;  %v306_v17 = vld [vmem:[%s2248_s1 + $0x7a0] sm:$0xff] }
  0x6d   :  { %1210 = vmatpush3.msra.mxu1 %v223_v19  ;;  %1170 = vmatprep.subr.mxu0 %v206_v20  ;;  %v258_v18 = vld [vmem:[%s2248_s1 + $0x620] sm:$0xff]  ;;  %v273_v20 = vld [vmem:[%s2248_s1 + $0x698] sm:$0xff] }
  0x6e   :  { %1211 = vmatprep.subr.mxu1 %v238_v21  ;;  %1171 = vmatpush3.msra.mxu0 %v190_v22  ;;  %v290_v19 = vld [vmem:[%s2248_s1 + $0x720] sm:$0xff]  ;;  %v305_v21 = vld [vmem:[%s2248_s1 + $0x798] sm:$0xff] }
  0x6f   :  { %709 = vmatprep.mubr.f32.mxu0 %v23_v23  ;;  %1212 = vmatpush3.msra.mxu1 %v222_v24  ;;  %v257_v22 = vld [vmem:[%s2248_s1 + $0x618] sm:$0xff]  ;;  %v272_v24 = vld [vmem:[%s2248_s1 + $0x690] sm:$0xff] }
  0x70   :  { %710 = vmatmul.mubr.f32.vlgmr.msra.gmra.mxu0 %v22_v25  ;;  %789 = vmatprep.mubr.f32.mxu1 %v25_v26  ;;  %v289_v23 = vld [vmem:[%s2248_s1 + $0x718] sm:$0xff]  ;;  %v304_v25 = vld [vmem:[%s2248_s1 + $0x790] sm:$0xff] }
  0x71   :  { %1222 = vmatprep.subr.mxu0 %v285_v27  ;;  %1263 = vmatprep.subr.mxu1 %v317_v28  ;;  %v256_v26 = vld [vmem:[%s2248_s1 + $0x610] sm:$0xff]  ;;  %v271_v28 = vld [vmem:[%s2248_s1 + $0x688] sm:$0xff] }
  0x72   :  { %790 = vmatmul.mubr.f32.vlgmr.msra.gmra.mxu1 %v24_v29  ;;  %1223 = vmatpush3.msra.mxu0 %v269_v30  ;;  %v288_v27 = vld [vmem:[%s2248_s1 + $0x710] sm:$0xff]  ;;  %v303_v29 = vld [vmem:[%s2248_s1 + $0x788] sm:$0xff] }
  0x73   :  { %1264 = vmatpush3.msra.mxu1 %v301_v31  ;;  %1224 = vmatprep.subr.mxu0 %v284_v32  ;;  %v255_v30 = vld [vmem:[%s2248_s1 + $0x608] sm:$0xff]  ;;  %v270_v32 = vld [vmem:[%s2248_s1 + $0x680] sm:$0xff] }
  0x74   :  { %1265 = vmatprep.subr.mxu1 %v316_v33  ;;  %714 = vmatprep.mubr.f32.mxu0 %v39_v34  ;;  %v287_v31 = vld [vmem:[%s2248_s1 + $0x708] sm:$0xff]  ;;  %v302_v33 = vld [vmem:[%s2248_s1 + $0x780] sm:$0xff] }
  0x75   :  { %1225 = vmatpush3.msra.mxu0 %v268_v35  ;;  %1266 = vmatpush3.msra.mxu1 %v300_v36  ;;  %v254_v34 = vld [vmem:[%s2248_s1 + $0x600] sm:$0xff]  ;;  %v27_v35 = vld [vmem:[%s2249_s0 + $0x68] sm:$0xff] }
  0x76   :  { %715 = vmatmul.mubr.f32.gmra.mxu0 %v38_v37  ;;  %1226 = vmatprep.subr.mxu0 %v283_v38  ;;  %v286_v36 = vld [vmem:[%s2248_s1 + $0x700] sm:$0xff]  ;;  %v29_v37 = vld [vmem:[%s2249_s0 + $0x78] sm:$0xff] }
  0x77   :  { %1267 = vmatprep.subr.mxu1 %v315_v39  ;;  %794 = vmatprep.mubr.f32.mxu1 %v41_v40  ;;  %v26_v38 = vld [vmem:[%s2249_s0 + $0x60] sm:$0xff]  ;;  %v28_v39 = vld [vmem:[%s2249_s0 + $0x70] sm:$0xff]  ;;  %v43_v40 = vld [vmem:[%s2249_s0 + $0xe8] sm:$0xff] }
  0x78   :  { %1227 = vmatpush3.msra.mxu0 %v267_v41  ;;  %1268 = vmatpush3.msra.mxu1 %v299_v42  ;;  %v45_v41 = vld [vmem:[%s2249_s0 + $0xf8] sm:$0xff]  ;;  %v42_v42 = vld [vmem:[%s2249_s0 + $0xe0] sm:$0xff] }
  0x79   :  { %1228 = vmatprep.subr.mxu0 %v282_v43  ;;  %795 = vmatmul.mubr.f32.gmra.mxu1 %v40_v44  ;;  %v44_v43 = vld [vmem:[%s2249_s0 + $0xf0] sm:$0xff]  ;;  %v59_v44 = vld [vmem:[%s2249_s0 + $0x168] sm:$0x3] }
  0x7a   :  { %1269 = vmatprep.subr.mxu1 %v314_v45  ;;  %719 = vmatprep.mubr.f32.mxu0 %v55_v46  ;;  %v61_v45 = vld [vmem:[%s2249_s0 + $0x178] sm:$0x3]  ;;  %v58_v46 = vld [vmem:[%s2249_s0 + $0x160] sm:$0x3] }
  0x7b   :  { %1229 = vmatpush3.msra.mxu0 %v266_v47  ;;  %1270 = vmatpush3.msra.mxu1 %v298_v48  ;;  %v60_v47 = vld [vmem:[%s2249_s0 + $0x170] sm:$0x3] }
  0x7c   :  { %720 = vmatmul.mubr.f32.gmra.mxu0 %v54_v49  ;;  %1230 = vmatprep.subr.mxu0 %v281_v50 }
  0x7d   :  { %1271 = vmatprep.subr.mxu1 %v313_v51  ;;  %799 = vmatprep.mubr.f32.mxu1 %v57_v52 }
  0x7e   :  { %1231 = vmatpush3.msra.mxu0 %v265_v53  ;;  %1272 = vmatpush3.msra.mxu1 %v297_v54 }
  0x7f   :  { %1232 = vmatprep.subr.mxu0 %v280_v55  ;;  %800 = vmatmul.mubr.f32.gmra.mxu1 %v56_v56 }
  0x80   :  { %1273 = vmatprep.subr.mxu1 %v312_v57  ;;  %1233 = vmatpush3.msra.mxu0 %v264_v58 }
  0x81   :  { %1274 = vmatpush3.msra.mxu1 %v296_v59  ;;  %1234 = vmatprep.subr.mxu0 %v279_v60 }
  0x82   :  { %1275 = vmatprep.subr.mxu1 %v311_v61  ;;  %1235 = vmatpush3.msra.mxu0 %v263_v62 }
  0x83   :  { %1276 = vmatpush3.msra.mxu1 %v295_v63  ;;  %1236 = vmatprep.subr.mxu0 %v278_v0 }
  0x84   :  { %1277 = vmatprep.subr.mxu1 %v310_v1  ;;  %1237 = vmatpush3.msra.mxu0 %v262_v2 }
  0x85   :  { %1278 = vmatpush3.msra.mxu1 %v294_v3  ;;  %1238 = vmatprep.subr.mxu0 %v277_v4 }
  0x86   :  { %1279 = vmatprep.subr.mxu1 %v309_v5  ;;  %1239 = vmatpush3.msra.mxu0 %v261_v6 }
  0x87   :  { %1280 = vmatpush3.msra.mxu1 %v293_v7  ;;  %1240 = vmatprep.subr.mxu0 %v276_v8 }
  0x88   :  { %1281 = vmatprep.subr.mxu1 %v308_v9  ;;  %1241 = vmatpush3.msra.mxu0 %v260_v10 }
  0x89   :  { %1282 = vmatpush3.msra.mxu1 %v292_v11  ;;  %1242 = vmatprep.subr.mxu0 %v275_v12 }
  0x8a   :  { %1283 = vmatprep.subr.mxu1 %v307_v13  ;;  %1243 = vmatpush3.msra.mxu0 %v259_v14  ;;  %v975_v13 = vld [vmem:[%s2250_s2] ss:$0 sm:$0xff] }
  0x8b   :  { %1284 = vmatpush3.msra.mxu1 %v291_v15  ;;  %1244 = vmatprep.subr.mxu0 %v274_v16 }
  0x8c   :  { %1285 = vmatprep.subr.mxu1 %v306_v17  ;;  %1245 = vmatpush3.msra.mxu0 %v258_v18 }
  0x8d   :  { %1286 = vmatpush3.msra.mxu1 %v290_v19  ;;  %1246 = vmatprep.subr.mxu0 %v273_v20 }
  0x8e   :  { %1287 = vmatprep.subr.mxu1 %v305_v21  ;;  %1247 = vmatpush3.msra.mxu0 %v257_v22 }
  0x8f   :  { %1288 = vmatpush3.msra.mxu1 %v289_v23  ;;  %1248 = vmatprep.subr.mxu0 %v272_v24 }
  0x90   :  { %1289 = vmatprep.subr.mxu1 %v304_v25  ;;  %1249 = vmatpush3.msra.mxu0 %v256_v26 }
  0x91   :  { %1290 = vmatpush3.msra.mxu1 %v288_v27  ;;  %1250 = vmatprep.subr.mxu0 %v271_v28 }
  0x92   :  { %1291 = vmatprep.subr.mxu1 %v303_v29  ;;  %1251 = vmatpush3.msra.mxu0 %v255_v30 }
  0x93   :  { %1292 = vmatpush3.msra.mxu1 %v287_v31  ;;  %1252 = vmatprep.subr.mxu0 %v270_v32 }
  0x94   :  { %1293 = vmatprep.subr.mxu1 %v302_v33  ;;  %1253 = vmatpush3.msra.mxu0 %v254_v34 }
  0x95   :  { %869 = vmatprep.mubr.f32.mxu0 %v27_v35  ;;  %1294 = vmatpush3.msra.mxu1 %v286_v36 }
  0x96   :  { %949 = vmatprep.mubr.f32.mxu1 %v29_v37  ;;  %870 = vmatmul.mubr.f32.vlgmr.msra.gmra.mxu0 %v26_v38 }
  0x97   :  { %950 = vmatmul.mubr.f32.vlgmr.msra.gmra.mxu1 %v28_v39  ;;  %874 = vmatprep.mubr.f32.mxu0 %v43_v40 }
  0x98   :  { %954 = vmatprep.mubr.f32.mxu1 %v45_v41 }
  0x9a   :  { %875 = vmatmul.mubr.f32.gmra.mxu0 %v42_v42 }
  0x9b   :  { %955 = vmatmul.mubr.f32.gmra.mxu1 %v44_v43  ;;  %879 = vmatprep.mubr.f32.mxu0 %v59_v44 }
  0x9c   :  { %959 = vmatprep.mubr.f32.mxu1 %v61_v45 }
  0x9e   :  { %880 = vmatmul.mubr.f32.gmra.mxu0 %v58_v46 }
  0x9f   :  { %960 = vmatmul.mubr.f32.gmra.mxu1 %v60_v47 }
  0xe4   :  { %v1008_v48 = vpop.f32.mrf.mxu0 }
  0xe6   :  { %v1049_v49 = vpop.f32.mrf.mxu1  ;;  %v1009_v50 = vpop.f32.mrf.mxu0 }
  0xe7   :  { %v1010_v12 = vadd.f32 %v1009_v50, %v1008_v48 }
  0xe8   :  { %v1050_v51 = vpop.f32.mrf.mxu1 }
  0xe9   :  { %v392_v17 = vadd.f32 %v1010_v12, %v975_v13  ;;  %v1051_v18 = vadd.f32 %v1050_v51, %v1049_v49 }
  0xeb   :  { %v472_v24 = vadd.f32 %v1051_v18, %v392_v17 }
  0xfd   :  { %v1011_v52 = vpop.f32.mrf.mxu0 }
  0xff   :  { %v1012_v54 = vpop.f32.mrf.mxu0 }
 0x100   :  { %v1052_v53 = vpop.f32.mrf.mxu1  ;;  %v1013_v14 = vadd.f32 %v1012_v54, %v1011_v52 }
 0x102   :  { %v1053_v55 = vpop.f32.mrf.mxu1  ;;  %v397_v20 = vadd.f32 %v1013_v14, %v975_v13 }
 0x103   :  { %v1014_v56 = vpop.f32.mrf.mxu0  ;;  %v1054_v21 = vadd.f32 %v1053_v55, %v1052_v53 }
 0x105   :  { %v1015_v58 = vpop.f32.mrf.mxu0  ;;  %v477_v29 = vadd.f32 %v1054_v21, %v397_v20 }
 0x106   :  { %v1055_v57 = vpop.f32.mrf.mxu1  ;;  %v1016_v25 = vadd.f32 %v1015_v58, %v1014_v56 }
 0x108   :  { %v1056_v59 = vpop.f32.mrf.mxu1  ;;  %v402_v32 = vadd.f32 %v1016_v25, %v975_v13 }
 0x109   :  { %v1057_v33 = vadd.f32 %v1056_v59, %v1055_v57 }
 0x10a   :  { %v1090_v60 = vpop.f32.mrf.mxu0 }
 0x10b   :  { %v482_v42 = vadd.f32 %v1057_v33, %v402_v32 }
 0x10c   :  { %v1131_v61 = vpop.f32.mrf.mxu1  ;;  %v1091_v62 = vpop.f32.mrf.mxu0 }
 0x10d   :  { %v1092_v19 = vadd.f32 %v1091_v62, %v1090_v60 }
 0x10e   :  { %v1132_v63 = vpop.f32.mrf.mxu1 }
 0x10f   :  { %v552_v27 = vadd.f32 %v1092_v19, %v472_v24  ;;  %v1133_v28 = vadd.f32 %v1132_v63, %v1131_v61 }
 0x110   :  { %v1093_v0 = vpop.f32.mrf.mxu0 }
 0x111   :  { %v632_v37 = vadd.f32 %v1133_v28, %v552_v27 }
 0x112   :  { %v1094_v2 = vpop.f32.mrf.mxu0 }
 0x113   :  { %v1134_v1 = vpop.f32.mrf.mxu1  ;;  %v1095_v26 = vadd.f32 %v1094_v2, %v1093_v0 }
 0x115   :  { %v1135_v3 = vpop.f32.mrf.mxu1  ;;  %v557_v35 = vadd.f32 %v1095_v26, %v477_v29 }
 0x116   :  { %v1096_v4 = vpop.f32.mrf.mxu0  ;;  %v1136_v36 = vadd.f32 %v1135_v3, %v1134_v1 }
 0x118   :  { %v1097_v6 = vpop.f32.mrf.mxu0  ;;  %v637_v45 = vadd.f32 %v1136_v36, %v557_v35 }
 0x119   :  { %v1137_v5 = vpop.f32.mrf.mxu1  ;;  %v1098_v38 = vadd.f32 %v1097_v6, %v1096_v4 }
 0x11b   :  { %v1138_v7 = vpop.f32.mrf.mxu1  ;;  %v562_v48 = vadd.f32 %v1098_v38, %v482_v42 }
 0x11c   :  { %v1139_v49 = vadd.f32 %v1138_v7, %v1137_v5 }
 0x11e   :  { %v642_v59 = vadd.f32 %v1139_v49, %v562_v48 }
 0x130   :  { %v1172_v8 = vpop.f32.mrf.mxu0 }
 0x132   :  { %v1213_v9 = vpop.f32.mrf.mxu1  ;;  %v1173_v10 = vpop.f32.mrf.mxu0 }
 0x133   :  { %v1174_v34 = vadd.f32 %v1173_v10, %v1172_v8 }
 0x134   :  { %v1214_v11 = vpop.f32.mrf.mxu1 }
 0x135   :  { %v712_v43 = vadd.f32 %v1174_v34, %v632_v37  ;;  %v1215_v44 = vadd.f32 %v1214_v11, %v1213_v9 }
 0x136   :  { %v1175_v15 = vpop.f32.mrf.mxu0 }
 0x137   :  { %v792_v54 = vadd.f32 %v1215_v44, %v712_v43 }
 0x138   :  { %v1176_v22 = vpop.f32.mrf.mxu0 }
 0x139   :  { %v1216_v16 = vpop.f32.mrf.mxu1  ;;  %v1177_v39 = vadd.f32 %v1176_v22, %v1175_v15 }
 0x13b   :  { %v1217_v23 = vpop.f32.mrf.mxu1  ;;  %v717_v50 = vadd.f32 %v1177_v39, %v637_v45 }
 0x13c   :  { %v1178_v30 = vpop.f32.mrf.mxu0  ;;  %v1218_v51 = vadd.f32 %v1217_v23, %v1216_v16 }
 0x13e   :  { %v1179_v40 = vpop.f32.mrf.mxu0  ;;  %v797_v62 = vadd.f32 %v1218_v51, %v717_v50 }
 0x13f   :  { %v1219_v31 = vpop.f32.mrf.mxu1  ;;  %v1180_v55 = vadd.f32 %v1179_v40, %v1178_v30 }
 0x141   :  { %v1220_v41 = vpop.f32.mrf.mxu1  ;;  %v722_v1 = vadd.f32 %v1180_v55, %v642_v59 }
 0x142   :  { %v1221_v2 = vadd.f32 %v1220_v41, %v1219_v31 }
 0x144   :  { %v802_v12 = vadd.f32 %v1221_v2, %v722_v1 }
 0x156   :  { %v1254_v46 = vpop.f32.mrf.mxu0 }
 0x157   :  { %v1295_v47 = vpop.f32.mrf.mxu1 }
 0x158   :  { %v1255_v52 = vpop.f32.mrf.mxu0 }
 0x159   :  { %v1296_v53 = vpop.f32.mrf.mxu1  ;;  %v1256_v56 = vadd.f32 %v1255_v52, %v1254_v46 }
 0x15a   :  { %v1257_v57 = vpop.f32.mrf.mxu0  ;;  %v1297_v61 = vadd.f32 %v1296_v53, %v1295_v47 }
 0x15b   :  { %v1298_v58 = vpop.f32.mrf.mxu1  ;;  %v872_v60 = vadd.f32 %v1256_v56, %v792_v54 }
 0x15c   :  { %v1258_v63 = vpop.f32.mrf.mxu0 }
 0x15d   :  { %v1299_v0 = vpop.f32.mrf.mxu1  ;;  %v952_v3 = vadd.f32 %v1297_v61, %v872_v60  ;;  %v1259_v4 = vadd.f32 %v1258_v63, %v1257_v57 }
 0x15e   :  { %v1260_v5 = vpop.f32.mrf.mxu0  ;;  %v1300_v9 = vadd.f32 %v1299_v0, %v1298_v58 }
 0x15f   :  { %v1301_v6 = vpop.f32.mrf.mxu1  ;;  %v965_v7 = vmax.f32 %v952_v3, 0.0  ;;  %v877_v8 = vadd.f32 %v1259_v4, %v797_v62 }
 0x160   :  { %v1261_v10 = vpop.f32.mrf.mxu0 }
 0x161   :  { %v1302_v11 = vpop.f32.mrf.mxu1  ;;  %968 = vst [vmem:[%s2251_s3] sm:$0xff] %v965_v7  ;;  %v957_v13 = vadd.f32 %v1300_v9, %v877_v8  ;;  %v1262_v14 = vadd.f32 %v1261_v10, %v1260_v5 }
 0x162   :  { %v1303_v17 = vadd.f32 %v1302_v11, %v1301_v6 }
 0x163   :  { %v966_v15 = vmax.f32 %v957_v13, 0.0  ;;  %v882_v16 = vadd.f32 %v1262_v14, %v802_v12 }
 0x165   :  { %969 = vst [vmem:[%s2251_s3 + $0x8] sm:$0xff] %v966_v15  ;;  %v962_v18 = vadd.f32 %v1303_v17, %v882_v16 }
 0x167   :  { %v967_v19 = vmax.f32 %v962_v18, 0.0 }
 0x169   :  { %970 = vst [vmem:[%s2251_s3 + $0x10] sm:$0x3] %v967_v19 }

// kernel: _forward_impl.5
= control target key start
LH: loop header
LB: loop body
LE: loop exit
PB: predicated region body
PF: predicated region fallthrough
CT: control target
= control target key end

     0   :  { %v1115_v27 = vmov 1983009808   ;;  %v188_v29 = vlaneseq  ;;  %s1768_s0 = inlined_call_operand.vmem [shape: f32[2,1152], index: 0, kind: input, shape index: {}]   ;;  %s1769_s1 = inlined_call_operand.vmem [shape: f32[1152,128], index: 1, kind: input, shape index: {}]   ;;  %s1770_s2 = inlined_call_operand.vmem [shape: f32[1,128], index: 2, kind: input, shape index: {}]   ;;  %s1771_s3 = inlined_call_operand.vmem [shape: f32[128,128], index: 3, kind: input, shape index: {}]   ;;  %s1772_s4 = inlined_call_operand.vmem [shape: f32[1,128], index: 4, kind: input, shape index: {}]   ;;  %s1773_s5 = inlined_call_operand.vmem [shape: f32[128,128], index: 5, kind: input, shape index: {}]   ;;  %s1774_s6 = inlined_call_operand.vmem [shape: f32[1,128], index: 6, kind: input, shape index: {}]   ;;  %s1775_s7 = inlined_call_operand.hbm [shape: f32[2,128], index: 7, kind: output, shape index: {}]  }
   0x1   :  { %v61_v0 = vld [vmem:[%s1769_s1 + $0xf8] sm:$0xff]  ;;  %v60_v2 = vld [vmem:[%s1769_s1 + $0xf0] sm:$0xff]  ;;  %v59_v6 = vld [vmem:[%s1769_s1 + $0xe8] sm:$0xff]  ;;  %v186_v28 = vunpack.c.l.s4 %v1115_v27 }
   0x2   :  { %v45_v1 = vld [vmem:[%s1769_s1 + $0x78] sm:$0xff]  ;;  %791 = vmatprep.subr.mxu0 %v61_v0  ;;  %v44_v4 = vld [vmem:[%s1769_s1 + $0x70] sm:$0xff]  ;;  %v43_v8 = vld [vmem:[%s1769_s1 + $0x68] sm:$0xff]  ;;  %v189_v39 = vshrl.u32 %v188_v29, 7 }
   0x3   :  { %v93_v3 = vld [vmem:[%s1769_s1 + $0x1f8] sm:$0xff]  ;;  %792 = vmatpush3.msra.mxu0 %v45_v1  ;;  %v92_v7 = vld [vmem:[%s1769_s1 + $0x1f0] sm:$0xff]  ;;  %v91_v10 = vld [vmem:[%s1769_s1 + $0x1e8] sm:$0xff]  ;;  %v187_v38 = vunpack.c.0.s8 %v186_v28 }
   0x4   :  { %v77_v5 = vld [vmem:[%s1769_s1 + $0x178] sm:$0xff]  ;;  %826 = vmatprep.subr.mxu1 %v93_v3  ;;  %793 = vmatprep.subr.mxu0 %v60_v2  ;;  %v76_v9 = vld [vmem:[%s1769_s1 + $0x170] sm:$0xff]  ;;  %v58_v11 = vld [vmem:[%s1769_s1 + $0xe0] sm:$0xff] }
   0x5   :  { %827 = vmatpush3.msra.mxu1 %v77_v5  ;;  %794 = vmatpush3.msra.mxu0 %v44_v4  ;;  %v75_v12 = vld [vmem:[%s1769_s1 + $0x168] sm:$0xff]  ;;  %v42_v13 = vld [vmem:[%s1769_s1 + $0x60] sm:$0xff]  ;;  %v57_v15 = vld [vmem:[%s1769_s1 + $0xd8] sm:$0xff]  ;;  %v1288_v48 = vsub.s32 %v187_v38, %v189_v39 }
   0x6   :  { %828 = vmatprep.subr.mxu1 %v92_v7  ;;  %795 = vmatprep.subr.mxu0 %v59_v6  ;;  %v90_v14 = vld [vmem:[%s1769_s1 + $0x1e0] sm:$0xff]  ;;  %v41_v17 = vld [vmem:[%s1769_s1 + $0x58] sm:$0xff]  ;;  %v56_v19 = vld [vmem:[%s1769_s1 + $0xd0] sm:$0xff] }
   0x7   :  { %829 = vmatpush3.msra.mxu1 %v76_v9  ;;  %796 = vmatpush3.msra.mxu0 %v43_v8  ;;  %v74_v16 = vld [vmem:[%s1769_s1 + $0x160] sm:$0xff]  ;;  %v89_v18 = vld [vmem:[%s1769_s1 + $0x1d8] sm:$0xff]  ;;  %v40_v21 = vld [vmem:[%s1769_s1 + $0x50] sm:$0xff] }
   0x8   :  { %830 = vmatprep.subr.mxu1 %v91_v10  ;;  %797 = vmatprep.subr.mxu0 %v58_v11  ;;  %v73_v20 = vld [vmem:[%s1769_s1 + $0x158] sm:$0xff]  ;;  %v88_v22 = vld [vmem:[%s1769_s1 + $0x1d0] sm:$0xff]  ;;  %v55_v23 = vld [vmem:[%s1769_s1 + $0xc8] sm:$0xff] }
   0x9   :  { %831 = vmatpush3.msra.mxu1 %v75_v12  ;;  %798 = vmatpush3.msra.mxu0 %v42_v13  ;;  %v72_v24 = vld [vmem:[%s1769_s1 + $0x150] sm:$0xff]  ;;  %v39_v25 = vld [vmem:[%s1769_s1 + $0x48] sm:$0xff]  ;;  %v54_v30 = vld [vmem:[%s1769_s1 + $0xc0] sm:$0xff] }
   0xa   :  { %832 = vmatprep.subr.mxu1 %v90_v14  ;;  %799 = vmatprep.subr.mxu0 %v57_v15  ;;  %v87_v26 = vld [vmem:[%s1769_s1 + $0x1c8] sm:$0xff]  ;;  %v38_v32 = vld [vmem:[%s1769_s1 + $0x40] sm:$0xff]  ;;  %v53_v34 = vld [vmem:[%s1769_s1 + $0xb8] sm:$0xff] }
   0xb   :  { %833 = vmatpush3.msra.mxu1 %v74_v16  ;;  %800 = vmatpush3.msra.mxu0 %v41_v17  ;;  %v71_v31 = vld [vmem:[%s1769_s1 + $0x148] sm:$0xff]  ;;  %v86_v33 = vld [vmem:[%s1769_s1 + $0x1c0] sm:$0xff]  ;;  %v37_v36 = vld [vmem:[%s1769_s1 + $0x38] sm:$0xff] }
   0xc   :  { %834 = vmatprep.subr.mxu1 %v89_v18  ;;  %801 = vmatprep.subr.mxu0 %v56_v19  ;;  %v70_v35 = vld [vmem:[%s1769_s1 + $0x140] sm:$0xff]  ;;  %v85_v37 = vld [vmem:[%s1769_s1 + $0x1b8] sm:$0xff]  ;;  %v52_v40 = vld [vmem:[%s1769_s1 + $0xb0] sm:$0xff] }
   0xd   :  { %835 = vmatpush3.msra.mxu1 %v73_v20  ;;  %802 = vmatpush3.msra.mxu0 %v40_v21  ;;  %v69_v41 = vld [vmem:[%s1769_s1 + $0x138] sm:$0xff]  ;;  %v36_v42 = vld [vmem:[%s1769_s1 + $0x30] sm:$0xff]  ;;  %v51_v44 = vld [vmem:[%s1769_s1 + $0xa8] sm:$0xff] }
   0xe   :  { %836 = vmatprep.subr.mxu1 %v88_v22  ;;  %803 = vmatprep.subr.mxu0 %v55_v23  ;;  %v84_v43 = vld [vmem:[%s1769_s1 + $0x1b0] sm:$0xff]  ;;  %v35_v46 = vld [vmem:[%s1769_s1 + $0x28] sm:$0xff]  ;;  %v50_v49 = vld [vmem:[%s1769_s1 + $0xa0] sm:$0xff] }
   0xf   :  { %837 = vmatpush3.msra.mxu1 %v72_v24  ;;  %804 = vmatpush3.msra.mxu0 %v39_v25  ;;  %v68_v45 = vld [vmem:[%s1769_s1 + $0x130] sm:$0xff]  ;;  %v83_v47 = vld [vmem:[%s1769_s1 + $0x1a8] sm:$0xff]  ;;  %v27_v51 = vld [vmem:[%s1768_s0] sm:$0xff] }
  0x10   :  { %838 = vmatprep.subr.mxu1 %v87_v26  ;;  %805 = vmatprep.subr.mxu0 %v54_v30  ;;  %v67_v50 = vld [vmem:[%s1769_s1 + $0x128] sm:$0xff]  ;;  %v34_v52 = vld [vmem:[%s1769_s1 + $0x20] sm:$0xff]  ;;  %v49_v54 = vld [vmem:[%s1769_s1 + $0x98] sm:$0xff]  ;;  %v191_v58 = vrot.slane %v27_v51, %v1288_v48  ;;  %v184_v59 = vcombine.high %v27_v51, %v27_v51 }
  0x11   :  { %839 = vmatpush3.msra.mxu1 %v71_v31  ;;  %806 = vmatpush3.msra.mxu0 %v38_v32  ;;  %v82_v53 = vld [vmem:[%s1769_s1 + $0x1a0] sm:$0xff]  ;;  %v33_v56 = vld [vmem:[%s1769_s1 + $0x18] sm:$0xff]  ;;  %v48_v60 = vld [vmem:[%s1769_s1 + $0x90] sm:$0xff] }
  0x12   :  { %840 = vmatprep.subr.mxu1 %v86_v33  ;;  %807 = vmatprep.subr.mxu0 %v53_v34  ;;  %v66_v55 = vld [vmem:[%s1769_s1 + $0x120] sm:$0xff]  ;;  %v81_v57 = vld [vmem:[%s1769_s1 + $0x198] sm:$0xff]  ;;  %v32_v62 = vld [vmem:[%s1769_s1 + $0x10] sm:$0xff]  ;;  %v199_v4 = vcombine.high %v191_v58, %v191_v58  ;;  %v198_v5 = vrot.slane %v184_v59, %v1288_v48 }
  0x13   :  { %841 = vmatpush3.msra.mxu1 %v70_v35  ;;  %808 = vmatpush3.msra.mxu0 %v37_v36  ;;  %v65_v61 = vld [vmem:[%s1769_s1 + $0x118] sm:$0xff]  ;;  %v80_v63 = vld [vmem:[%s1769_s1 + $0x190] sm:$0xff]  ;;  %v47_v0 = vld [vmem:[%s1769_s1 + $0x88] sm:$0xff] }
  0x14   :  { %842 = vmatprep.subr.mxu1 %v85_v37  ;;  %809 = vmatprep.subr.mxu0 %v52_v40  ;;  %v64_v1 = vld [vmem:[%s1769_s1 + $0x110] sm:$0xff]  ;;  %v31_v2 = vld [vmem:[%s1769_s1 + $0x8] sm:$0xff]  ;;  %v46_v6 = vld [vmem:[%s1769_s1 + $0x80] sm:$0xff]  ;;  %v200_v12 = vcombine.high %v198_v5, %v198_v5 }
  0x15   :  { %843 = vmatpush3.msra.mxu1 %v69_v41  ;;  %810 = vmatpush3.msra.mxu0 %v36_v42  ;;  %v79_v3 = vld [vmem:[%s1769_s1 + $0x188] sm:$0xff]  ;;  %v30_v7 = vld [vmem:[%s1769_s1] sm:$0xff]  ;;  %v125_v10 = vld [vmem:[%s1769_s1 + $0x2f8] sm:$0xff] }
  0x16   :  { %844 = vmatprep.subr.mxu1 %v84_v43  ;;  %811 = vmatprep.subr.mxu0 %v51_v44  ;;  %v63_v8 = vld [vmem:[%s1769_s1 + $0x108] sm:$0xff]  ;;  %v78_v9 = vld [vmem:[%s1769_s1 + $0x180] sm:$0xff]  ;;  %v109_v13 = vld [vmem:[%s1769_s1 + $0x278] sm:$0xff] }
  0x17   :  { %845 = vmatpush3.msra.mxu1 %v68_v45  ;;  %812 = vmatpush3.msra.mxu0 %v35_v46  ;;  %v62_v11 = vld [vmem:[%s1769_s1 + $0x100] sm:$0xff]  ;;  %v124_v14 = vld [vmem:[%s1769_s1 + $0x2f0] sm:$0xff]  ;;  %v157_v15 = vld [vmem:[%s1769_s1 + $0x3f8] sm:$0xff] }
  0x18   :  { %846 = vmatprep.subr.mxu1 %v83_v47  ;;  %813 = vmatprep.subr.mxu0 %v50_v49  ;;  %v108_v16 = vld [vmem:[%s1769_s1 + $0x270] sm:$0xff]  ;;  %v141_v17 = vld [vmem:[%s1769_s1 + $0x378] sm:$0xff]  ;;  %v123_v18 = vld [vmem:[%s1769_s1 + $0x2e8] sm:$0xff] }
  0x19   :  { %847 = vmatpush3.msra.mxu1 %v67_v50  ;;  %814 = vmatpush3.msra.mxu0 %v34_v52  ;;  %v156_v19 = vld [vmem:[%s1769_s1 + $0x3f0] sm:$0xff]  ;;  %v107_v20 = vld [vmem:[%s1769_s1 + $0x268] sm:$0xff]  ;;  %v122_v22 = vld [vmem:[%s1769_s1 + $0x2e0] sm:$0xff] }
  0x1a   :  { %848 = vmatprep.subr.mxu1 %v82_v53  ;;  %815 = vmatprep.subr.mxu0 %v49_v54  ;;  %v140_v21 = vld [vmem:[%s1769_s1 + $0x370] sm:$0xff]  ;;  %v155_v23 = vld [vmem:[%s1769_s1 + $0x3e8] sm:$0xff]  ;;  %v106_v24 = vld [vmem:[%s1769_s1 + $0x260] sm:$0xff] }
  0x1b   :  { %849 = vmatpush3.msra.mxu1 %v66_v55  ;;  %816 = vmatpush3.msra.mxu0 %v33_v56  ;;  %v139_v25 = vld [vmem:[%s1769_s1 + $0x368] sm:$0xff]  ;;  %v121_v26 = vld [vmem:[%s1769_s1 + $0x2d8] sm:$0xff]  ;;  %v154_v27 = vld [vmem:[%s1769_s1 + $0x3e0] sm:$0xff] }
  0x1c   :  { %850 = vmatprep.subr.mxu1 %v81_v57  ;;  %817 = vmatprep.subr.mxu0 %v48_v60  ;;  %v105_v28 = vld [vmem:[%s1769_s1 + $0x258] sm:$0xff]  ;;  %v138_v29 = vld [vmem:[%s1769_s1 + $0x360] sm:$0xff]  ;;  %v120_v30 = vld [vmem:[%s1769_s1 + $0x2d0] sm:$0xff] }
  0x1d   :  { %851 = vmatpush3.msra.mxu1 %v65_v61  ;;  %818 = vmatpush3.msra.mxu0 %v32_v62  ;;  %v153_v31 = vld [vmem:[%s1769_s1 + $0x3d8] sm:$0xff]  ;;  %v104_v32 = vld [vmem:[%s1769_s1 + $0x250] sm:$0xff]  ;;  %v119_v34 = vld [vmem:[%s1769_s1 + $0x2c8] sm:$0xff] }
  0x1e   :  { %852 = vmatprep.subr.mxu1 %v80_v63  ;;  %819 = vmatprep.subr.mxu0 %v47_v0  ;;  %v137_v33 = vld [vmem:[%s1769_s1 + $0x358] sm:$0xff]  ;;  %v152_v35 = vld [vmem:[%s1769_s1 + $0x3d0] sm:$0xff]  ;;  %v103_v36 = vld [vmem:[%s1769_s1 + $0x248] sm:$0xff] }
  0x1f   :  { %853 = vmatpush3.msra.mxu1 %v64_v1  ;;  %820 = vmatpush3.msra.mxu0 %v31_v2  ;;  %v136_v37 = vld [vmem:[%s1769_s1 + $0x350] sm:$0xff]  ;;  %v118_v38 = vld [vmem:[%s1769_s1 + $0x2c0] sm:$0xff]  ;;  %v151_v39 = vld [vmem:[%s1769_s1 + $0x3c8] sm:$0xff] }
  0x20   :  { %854 = vmatprep.subr.mxu1 %v79_v3  ;;  %821 = vmatprep.subr.mxu0 %v46_v6  ;;  %v102_v40 = vld [vmem:[%s1769_s1 + $0x240] sm:$0xff]  ;;  %v135_v41 = vld [vmem:[%s1769_s1 + $0x348] sm:$0xff]  ;;  %v117_v42 = vld [vmem:[%s1769_s1 + $0x2b8] sm:$0xff] }
  0x21   :  { %298 = vmatprep.mubr.f32.mxu0 %v199_v4  ;;  %822 = vmatpush3.msra.mxu0 %v30_v7  ;;  %v150_v43 = vld [vmem:[%s1769_s1 + $0x3c0] sm:$0xff]  ;;  %v101_v44 = vld [vmem:[%s1769_s1 + $0x238] sm:$0xff]  ;;  %v116_v46 = vld [vmem:[%s1769_s1 + $0x2b0] sm:$0xff] }
  0x22   :  { %855 = vmatpush3.msra.mxu1 %v63_v8  ;;  %299 = vmatmul.mubr.f32.vlgmr.msra.gmra.mxu0 %v191_v58  ;;  %v134_v45 = vld [vmem:[%s1769_s1 + $0x340] sm:$0xff] }
  0x23   :  { %856 = vmatprep.subr.mxu1 %v78_v9  ;;  %861 = vmatprep.subr.mxu0 %v125_v10 }
  0x24   :  { %857 = vmatpush3.msra.mxu1 %v62_v11  ;;  %368 = vmatprep.mubr.f32.mxu1 %v200_v12 }
  0x25   :  { %862 = vmatpush3.msra.mxu0 %v109_v13  ;;  %369 = vmatmul.mubr.f32.vlgmr.msra.gmra.mxu1 %v198_v5 }
  0x26   :  { %863 = vmatprep.subr.mxu0 %v124_v14  ;;  %896 = vmatprep.subr.mxu1 %v157_v15 }
  0x27   :  { %864 = vmatpush3.msra.mxu0 %v108_v16  ;;  %897 = vmatpush3.msra.mxu1 %v141_v17 }
  0x28   :  { %865 = vmatprep.subr.mxu0 %v123_v18  ;;  %898 = vmatprep.subr.mxu1 %v156_v19 }
  0x29   :  { %866 = vmatpush3.msra.mxu0 %v107_v20  ;;  %899 = vmatpush3.msra.mxu1 %v140_v21 }
  0x2a   :  { %867 = vmatprep.subr.mxu0 %v122_v22  ;;  %900 = vmatprep.subr.mxu1 %v155_v23 }
  0x2b   :  { %868 = vmatpush3.msra.mxu0 %v106_v24  ;;  %901 = vmatpush3.msra.mxu1 %v139_v25 }
  0x2c   :  { %869 = vmatprep.subr.mxu0 %v121_v26  ;;  %902 = vmatprep.subr.mxu1 %v154_v27 }
  0x2d   :  { %870 = vmatpush3.msra.mxu0 %v105_v28  ;;  %903 = vmatpush3.msra.mxu1 %v138_v29 }
  0x2e   :  { %871 = vmatprep.subr.mxu0 %v120_v30  ;;  %904 = vmatprep.subr.mxu1 %v153_v31 }
  0x2f   :  { %872 = vmatpush3.msra.mxu0 %v104_v32  ;;  %905 = vmatpush3.msra.mxu1 %v137_v33 }
  0x30   :  { %873 = vmatprep.subr.mxu0 %v119_v34  ;;  %906 = vmatprep.subr.mxu1 %v152_v35 }
  0x31   :  { %874 = vmatpush3.msra.mxu0 %v103_v36  ;;  %907 = vmatpush3.msra.mxu1 %v136_v37 }
  0x32   :  { %875 = vmatprep.subr.mxu0 %v118_v38  ;;  %908 = vmatprep.subr.mxu1 %v151_v39 }
  0x33   :  { %876 = vmatpush3.msra.mxu0 %v102_v40 }
  0x34   :  { %12 = vsyncpa [#allocation3], 0  ;;  %909 = vmatpush3.msra.mxu1 %v135_v41  ;;  %877 = vmatprep.subr.mxu0 %v117_v42  ;;  %v149_v47 = vld [vmem:[%s1769_s1 + $0x3b8] sm:$0xff]  ;;  %v100_v49 = vld [vmem:[%s1769_s1 + $0x230] sm:$0xff]  ;;  %v1116_v19 = vmov 0.0   ;;  %vm1117_vm0 = vmmov 0  }
  0x35   :  { %910 = vmatprep.subr.mxu1 %v150_v43  ;;  %878 = vmatpush3.msra.mxu0 %v101_v44  ;;  %v133_v50 = vld [vmem:[%s1769_s1 + $0x338] sm:$0xff]  ;;  %v115_v51 = vld [vmem:[%s1769_s1 + $0x2a8] sm:$0xff]  ;;  %v148_v52 = vld [vmem:[%s1769_s1 + $0x3b0] sm:$0xff]  ;;  %s1118_s11 = smov [#allocation2]  }
  0x36   :  { %911 = vmatpush3.msra.mxu1 %v134_v45  ;;  %879 = vmatprep.subr.mxu0 %v116_v46  ;;  %v99_v53 = vld [vmem:[%s1769_s1 + $0x228] sm:$0xff]  ;;  %v132_v54 = vld [vmem:[%s1769_s1 + $0x330] sm:$0xff]  ;;  %v114_v55 = vld [vmem:[%s1769_s1 + $0x2a0] sm:$0xff]  ;;  %s779_s12 = sshll.u32 %s1118_s11, 4  ;;  %s780_s12 = int_to_ptr.vmem [resolvable:$true] %s779_s12 }
  0x37   :  { %912 = vmatprep.subr.mxu1 %v149_v47  ;;  %880 = vmatpush3.msra.mxu0 %v100_v49  ;;  %v147_v56 = vld [vmem:[%s1769_s1 + $0x3a8] sm:$0xff]  ;;  %v98_v57 = vld [vmem:[%s1769_s1 + $0x220] sm:$0xff]  ;;  %v113_v60 = vld [vmem:[%s1769_s1 + $0x298] sm:$0xff]  ;;  %p1098_p1 = scmp.lt.s32.totalorder %s780_s12, %s780_s12 }
  0x38   :  { %913 = vmatpush3.msra.mxu1 %v133_v50  ;;  %881 = vmatprep.subr.mxu0 %v115_v51  ;;  %v28_v58 = vld [vmem:[%s1768_s0 + $0x8] sm:$0xff]  ;;  %v146_v61 = vld [vmem:[%s1769_s1 + $0x3a0] sm:$0xff]  ;;  %v97_v62 = vld [vmem:[%s1769_s1 + $0x218] sm:$0xff] }
  0x39   :  { %914 = vmatprep.subr.mxu1 %v148_v52  ;;  %882 = vmatpush3.msra.mxu0 %v99_v53  ;;  %v131_v59 = vld [vmem:[%s1769_s1 + $0x328] sm:$0xff]  ;;  %v130_v63 = vld [vmem:[%s1769_s1 + $0x320] sm:$0xff]  ;;  %v112_v0 = vld [vmem:[%s1769_s1 + $0x290] sm:$0xff]  ;;  %v201_v1 = vcombine.high %v28_v58, %v28_v58  ;;  %v208_v4 = vrot.slane %v28_v58, %v1288_v48 }
  0x3a   :  { %915 = vmatpush3.msra.mxu1 %v132_v54  ;;  %883 = vmatprep.subr.mxu0 %v114_v55  ;;  %v145_v2 = vld [vmem:[%s1769_s1 + $0x398] sm:$0xff]  ;;  %v96_v3 = vld [vmem:[%s1769_s1 + $0x210] sm:$0xff]  ;;  %v111_v6 = vld [vmem:[%s1769_s1 + $0x288] sm:$0xff] }
  0x3b   :  { %916 = vmatprep.subr.mxu1 %v147_v56  ;;  %884 = vmatpush3.msra.mxu0 %v98_v57  ;;  %v129_v5 = vld [vmem:[%s1769_s1 + $0x318] sm:$0xff]  ;;  %v144_v7 = vld [vmem:[%s1769_s1 + $0x390] sm:$0xff]  ;;  %v95_v8 = vld [vmem:[%s1769_s1 + $0x208] sm:$0xff]  ;;  %v215_v11 = vrot.slane %v201_v1, %v1288_v48  ;;  %v216_v14 = vcombine.high %v208_v4, %v208_v4 }
  0x3c   :  { %917 = vmatpush3.msra.mxu1 %v131_v59  ;;  %885 = vmatprep.subr.mxu0 %v113_v60  ;;  %v128_v9 = vld [vmem:[%s1769_s1 + $0x310] sm:$0xff]  ;;  %v110_v10 = vld [vmem:[%s1769_s1 + $0x280] sm:$0xff]  ;;  %v143_v12 = vld [vmem:[%s1769_s1 + $0x388] sm:$0xff] }
  0x3d   :  { %918 = vmatprep.subr.mxu1 %v146_v61  ;;  %886 = vmatpush3.msra.mxu0 %v97_v62  ;;  %v94_v13 = vld [vmem:[%s1769_s1 + $0x200] sm:$0xff]  ;;  %v127_v15 = vld [vmem:[%s1769_s1 + $0x308] sm:$0xff]  ;;  %v217_v17 = vcombine.high %v215_v11, %v215_v11  ;;  %v173_v18 = vld [vmem:[%s1769_s1 + $0x478] sm:$0xff] }
  0x3e   :  { %919 = vmatpush3.msra.mxu1 %v130_v63  ;;  %887 = vmatprep.subr.mxu0 %v112_v0  ;;  %v142_v48 = vld [vmem:[%s1769_s1 + $0x380] sm:$0xff]  ;;  %v172_v20 = vld [vmem:[%s1769_s1 + $0x470] sm:$0xff]  ;;  %v171_v21 = vld [vmem:[%s1769_s1 + $0x468] sm:$0xff] }
  0x3f   :  { %920 = vmatprep.subr.mxu1 %v145_v2  ;;  %888 = vmatpush3.msra.mxu0 %v96_v3  ;;  %v126_v16 = vld [vmem:[%s1769_s1 + $0x300] sm:$0xff]  ;;  %v169_v23 = vld [vmem:[%s1769_s1 + $0x458] sm:$0xff]  ;;  %v168_v24 = vld [vmem:[%s1769_s1 + $0x450] sm:$0xff] }
  0x40   :  { %921 = vmatpush3.msra.mxu1 %v129_v5  ;;  %889 = vmatprep.subr.mxu0 %v111_v6  ;;  %v170_v22 = vld [vmem:[%s1769_s1 + $0x460] sm:$0xff]  ;;  %v167_v25 = vld [vmem:[%s1769_s1 + $0x448] sm:$0xff]  ;;  %v165_v27 = vld [vmem:[%s1769_s1 + $0x438] sm:$0xff] }
  0x41   :  { %922 = vmatprep.subr.mxu1 %v144_v7  ;;  %890 = vmatpush3.msra.mxu0 %v95_v8  ;;  %v166_v26 = vld [vmem:[%s1769_s1 + $0x440] sm:$0xff]  ;;  %v164_v28 = vld [vmem:[%s1769_s1 + $0x430] sm:$0xff]  ;;  %v163_v29 = vld [vmem:[%s1769_s1 + $0x428] sm:$0xff] }
  0x42   :  { %923 = vmatpush3.msra.mxu1 %v128_v9  ;;  %891 = vmatprep.subr.mxu0 %v110_v10  ;;  %v162_v30 = vld [vmem:[%s1769_s1 + $0x420] sm:$0xff]  ;;  %v161_v31 = vld [vmem:[%s1769_s1 + $0x418] sm:$0xff]  ;;  %v160_v32 = vld [vmem:[%s1769_s1 + $0x410] sm:$0xff] }
  0x43   :  { %924 = vmatprep.subr.mxu1 %v143_v12  ;;  %892 = vmatpush3.msra.mxu0 %v94_v13  ;;  %v159_v33 = vld [vmem:[%s1769_s1 + $0x408] sm:$0xff]  ;;  %v158_v34 = vld [vmem:[%s1769_s1 + $0x400] sm:$0xff]  ;;  %v788_v35 = vld.sshfl [vmem:[%s1768_s0 + $0x10] sm:$0x3 pattern:$0x76325410] }
  0x44   :  { %438 = vmatprep.mubr.f32.mxu0 %v216_v14  ;;  %925 = vmatpush3.msra.mxu1 %v127_v15  ;;  %v600_v36 = vld [vmem:[%s1771_s3 + $0x78] sm:$0xff]  ;;  %v599_v37 = vld [vmem:[%s1771_s3 + $0x70] sm:$0xff]  ;;  %v598_v38 = vld [vmem:[%s1771_s3 + $0x68] sm:$0xff] }
  0x45   :  { %439 = vmatmul.mubr.f32.vlgmr.msra.gmra.mxu0 %v208_v4  ;;  %926 = vmatprep.subr.mxu1 %v142_v48  ;;  %v597_v39 = vld [vmem:[%s1771_s3 + $0x60] sm:$0xff]  ;;  %v596_v40 = vld [vmem:[%s1771_s3 + $0x58] sm:$0xff]  ;;  %v595_v41 = vld [vmem:[%s1771_s3 + $0x50] sm:$0xff] }
  0x46   :  { %982 = vmatprep.subr.mxu0 %v1116_v19  ;;  %927 = vmatpush3.msra.mxu1 %v126_v16  ;;  %v594_v42 = vld [vmem:[%s1771_s3 + $0x48] sm:$0xff]  ;;  %v593_v43 = vld [vmem:[%s1771_s3 + $0x40] sm:$0xff]  ;;  %v592_v44 = vld [vmem:[%s1771_s3 + $0x38] sm:$0xff] }
  0x47   :  { %508 = vmatprep.mubr.f32.mxu1 %v217_v17  ;;  %983 = vmatpush3.msra.mxu0 %v173_v18  ;;  %v591_v45 = vld [vmem:[%s1771_s3 + $0x30] sm:$0xff]  ;;  %v590_v46 = vld [vmem:[%s1771_s3 + $0x28] sm:$0xff]  ;;  %v589_v47 = vld [vmem:[%s1771_s3 + $0x20] sm:$0xff] }
  0x48   :  { %509 = vmatmul.mubr.f32.vlgmr.msra.gmra.mxu1 %v215_v11  ;;  %984 = vmatprep.subr.mxu0 %v1116_v19  ;;  %v588_v49 = vld [vmem:[%s1771_s3 + $0x18] sm:$0xff]  ;;  %v587_v50 = vld [vmem:[%s1771_s3 + $0x10] sm:$0xff]  ;;  %v586_v51 = vld [vmem:[%s1771_s3 + $0x8] sm:$0xff] }
  0x49   :  { %985 = vmatpush3.msra.mxu0 %v172_v20  ;;  %1014 = vmatprep.mubr.msk.f32.mxu0 %vm1117_vm0, %v1116_v19  ;;  %v585_v52 = vld [vmem:[%s1771_s3] sm:$0xff]  ;;  %v694_v53 = vld [vmem:[%s1773_s5 + $0x78] sm:$0xff]  ;;  %v693_v54 = vld [vmem:[%s1773_s5 + $0x70] sm:$0xff] }
  0x4a   :  { %986 = vmatprep.subr.mxu0 %v1116_v19  ;;  %1017 = vmatprep.subr.mxu1 %v1116_v19  ;;  %v692_v55 = vld [vmem:[%s1773_s5 + $0x68] sm:$0xff]  ;;  %v691_v56 = vld [vmem:[%s1773_s5 + $0x60] sm:$0xff]  ;;  %v690_v57 = vld [vmem:[%s1773_s5 + $0x58] sm:$0xff] }
  0x4b   :  { %987 = vmatpush3.msra.mxu0 %v171_v21  ;;  %1049 = vmatprep.mubr.msk.f32.mxu1 %vm1117_vm0, %v1116_v19  ;;  %v689_v58 = vld [vmem:[%s1773_s5 + $0x50] sm:$0xff]  ;;  %v688_v59 = vld [vmem:[%s1773_s5 + $0x48] sm:$0xff]  ;;  %v687_v60 = vld [vmem:[%s1773_s5 + $0x40] sm:$0xff] }
  0x4c   :  { %988 = vmatprep.subr.mxu0 %v1116_v19  ;;  %1018 = vmatpush3.msra.mxu1 %v600_v36  ;;  %v686_v61 = vld [vmem:[%s1773_s5 + $0x38] sm:$0xff]  ;;  %v685_v62 = vld [vmem:[%s1773_s5 + $0x30] sm:$0xff]  ;;  %v684_v63 = vld [vmem:[%s1773_s5 + $0x28] sm:$0xff] }
  0x4d   :  { %989 = vmatpush3.msra.mxu0 %v170_v22  ;;  %1019 = vmatprep.subr.mxu1 %v1116_v19  ;;  %v683_v0 = vld [vmem:[%s1773_s5 + $0x20] sm:$0xff]  ;;  %v682_v1 = vld [vmem:[%s1773_s5 + $0x18] sm:$0xff] }
  0x4e   :  { %990 = vmatprep.subr.mxu0 %v1116_v19  ;;  %1020 = vmatpush3.msra.mxu1 %v599_v37  ;;  %v787_v7 = vld [vmem:[%s1770_s2] ss:$0 sm:$0xff] }
  0x4f   :  { %991 = vmatpush3.msra.mxu0 %v169_v23  ;;  %1021 = vmatprep.subr.mxu1 %v1116_v19  ;;  %v681_v23 = vld [vmem:[%s1773_s5 + $0x10] sm:$0xff] }
  0x50   :  { %992 = vmatprep.subr.mxu0 %v1116_v19  ;;  %1022 = vmatpush3.msra.mxu1 %v598_v38 }
  0x51   :  { %993 = vmatpush3.msra.mxu0 %v168_v24  ;;  %1023 = vmatprep.subr.mxu1 %v1116_v19  ;;  %v680_v24 = vld [vmem:[%s1773_s5 + $0x8] sm:$0xff] }
  0x52   :  { %994 = vmatprep.subr.mxu0 %v1116_v19  ;;  %1024 = vmatpush3.msra.mxu1 %v597_v39 }
  0x53   :  { %995 = vmatpush3.msra.mxu0 %v167_v25  ;;  %1025 = vmatprep.subr.mxu1 %v1116_v19  ;;  %v679_v25 = vld [vmem:[%s1773_s5] sm:$0xff]  ;;  %s1093_s5 = scalar_lea.vmem %s780_s12, 32 }
  0x54   :  { %996 = vmatprep.subr.mxu0 %v1116_v19  ;;  %1026 = vmatpush3.msra.mxu1 %v596_v40  ;;  %p1094_p0 = scmp.ne.s32.totalorder %s780_s12, %s1093_s5  ;;  %p1099_p2 = scmp.lt.s32.totalorder %s1093_s5, %s1093_s5 }
  0x55   :  { %997 = vmatpush3.msra.mxu0 %v166_v26  ;;  %1027 = vmatprep.subr.mxu1 %v1116_v19  ;;  %v789_v26 = vld [vmem:[%s1772_s4] ss:$0 sm:$0xff] }
  0x56   :  { %998 = vmatprep.subr.mxu0 %v1116_v19  ;;  %1028 = vmatpush3.msra.mxu1 %v595_v41  ;;  %p1100_p3 = por %p1099_p2, %p1098_p1 }
  0x57   :  { %999 = vmatpush3.msra.mxu0 %v165_v27  ;;  %1029 = vmatprep.subr.mxu1 %v1116_v19 }
  0x58   :  { %1000 = vmatprep.subr.mxu0 %v1116_v19  ;;  %1030 = vmatpush3.msra.mxu1 %v594_v42  ;;  %p1101_p4 = pnand %p1100_p3, %p1094_p0 }
  0x59   :  { %1001 = vmatpush3.msra.mxu0 %v164_v28  ;;  %1031 = vmatprep.subr.mxu1 %v1116_v19 }
  0x5a   :  { %1002 = vmatprep.subr.mxu0 %v1116_v19  ;;  %1032 = vmatpush3.msra.mxu1 %v593_v43 }
  0x5b   :  { %1003 = vmatpush3.msra.mxu0 %v163_v29  ;;  %1033 = vmatprep.subr.mxu1 %v1116_v19 }
  0x5c   :  { %1004 = vmatprep.subr.mxu0 %v1116_v19  ;;  %1034 = vmatpush3.msra.mxu1 %v592_v44 }
  0x5d   :  { %1005 = vmatpush3.msra.mxu0 %v162_v30  ;;  %1035 = vmatprep.subr.mxu1 %v1116_v19 }
  0x5e   :  { %1006 = vmatprep.subr.mxu0 %v1116_v19  ;;  %1036 = vmatpush3.msra.mxu1 %v591_v45 }
  0x5f   :  { %1007 = vmatpush3.msra.mxu0 %v161_v31  ;;  %1037 = vmatprep.subr.mxu1 %v1116_v19  ;;  %v790_v31 = vld [vmem:[%s1774_s6] ss:$0 sm:$0xff] }
  0x60   :  { %1008 = vmatprep.subr.mxu0 %v1116_v19  ;;  %1038 = vmatpush3.msra.mxu1 %v590_v46 }
  0x61   :  { %1009 = vmatpush3.msra.mxu0 %v160_v32  ;;  %1039 = vmatprep.subr.mxu1 %v1116_v19 }
  0x62   :  { %1010 = vmatprep.subr.mxu0 %v1116_v19  ;;  %1040 = vmatpush3.msra.mxu1 %v589_v47 }
  0x63   :  { %1011 = vmatpush3.msra.mxu0 %v159_v33  ;;  %1041 = vmatprep.subr.mxu1 %v1116_v19 }
  0x64   :  { %1012 = vmatprep.subr.mxu0 %v1116_v19  ;;  %1042 = vmatpush3.msra.mxu1 %v588_v49 }
  0x65   :  { %1013 = vmatpush3.msra.mxu0 %v158_v34  ;;  %1043 = vmatprep.subr.mxu1 %v1116_v19 }
  0x66   :  { %1015 = vmatmul.mubr.f32.vlgmr.msra.gmra.mxu0 %v788_v35  ;;  %1052 = vmatprep.subr.mxu0 %v1116_v19 }
  0x67   :  { %1084 = vmatprep.mubr.msk.f32.mxu0 %vm1117_vm0, %v1116_v19  ;;  %1044 = vmatpush3.msra.mxu1 %v587_v50 }
  0x68   :  { %1045 = vmatprep.subr.mxu1 %v1116_v19  ;;  %1053 = vmatpush3.msra.mxu0 %v694_v53 }
  0x69   :  { %1046 = vmatpush3.msra.mxu1 %v586_v51  ;;  %1054 = vmatprep.subr.mxu0 %v1116_v19 }
  0x6a   :  { %1047 = vmatprep.subr.mxu1 %v1116_v19  ;;  %1055 = vmatpush3.msra.mxu0 %v693_v54 }
  0x6b   :  { %1048 = vmatpush3.msra.mxu1 %v585_v52  ;;  %1056 = vmatprep.subr.mxu0 %v1116_v19 }
  0x6c   :  { %1057 = vmatpush3.msra.mxu0 %v692_v55 }
  0x6d   :  { %1058 = vmatprep.subr.mxu0 %v1116_v19 }
  0x6e   :  { %1059 = vmatpush3.msra.mxu0 %v691_v56 }
  0x6f   :  { %1060 = vmatprep.subr.mxu0 %v1116_v19 }
  0x70   :  { %1061 = vmatpush3.msra.mxu0 %v690_v57 }
  0x71   :  { %1062 = vmatprep.subr.mxu0 %v1116_v19 }
  0x72   :  { %1063 = vmatpush3.msra.mxu0 %v689_v58 }
  0x73   :  { %1064 = vmatprep.subr.mxu0 %v1116_v19 }
  0x74   :  { %1065 = vmatpush3.msra.mxu0 %v688_v59 }
  0x75   :  { %1066 = vmatprep.subr.mxu0 %v1116_v19 }
  0x76   :  { %1067 = vmatpush3.msra.mxu0 %v687_v60 }
  0x77   :  { %1068 = vmatprep.subr.mxu0 %v1116_v19 }
  0x78   :  { %1069 = vmatpush3.msra.mxu0 %v686_v61 }
  0x79   :  { %1070 = vmatprep.subr.mxu0 %v1116_v19 }
  0x7a   :  { %1071 = vmatpush3.msra.mxu0 %v685_v62 }
  0x7b   :  { %1072 = vmatprep.subr.mxu0 %v1116_v19 }
  0x7c   :  { %1073 = vmatpush3.msra.mxu0 %v684_v63 }
  0x7d   :  { %1074 = vmatprep.subr.mxu0 %v1116_v19 }
  0x7e   :  { %1075 = vmatpush3.msra.mxu0 %v683_v0 }
  0x7f   :  { %1076 = vmatprep.subr.mxu0 %v1116_v19 }
  0x80   :  { %1077 = vmatpush3.msra.mxu0 %v682_v1 }
  0x81   :  { %1078 = vmatprep.subr.mxu0 %v1116_v19 }
  0x82   :  { %1079 = vmatpush3.msra.mxu0 %v681_v23 }
  0x83   :  { %1080 = vmatprep.subr.mxu0 %v1116_v19 }
  0x84   :  { %1081 = vmatpush3.msra.mxu0 %v680_v24 }
  0x85   :  { %1082 = vmatprep.subr.mxu0 %v1116_v19 }
  0x86   :  { %1083 = vmatpush3.msra.mxu0 %v679_v25 }
  0xe2   :  { %v823_v2 = vpop.f32.mrf.mxu0 }
  0xe4   :  { %v824_v3 = vpop.f32.mrf.mxu0 }
  0xe5   :  { %v858_v4 = vpop.f32.mrf.mxu1  ;;  %v825_v6 = vadd.f32 %v824_v3, %v823_v2 }
  0xe7   :  { %v859_v8 = vpop.f32.mrf.mxu1  ;;  %v301_v11 = vadd.f32 %v825_v6, %v787_v7 }
  0xe8   :  { %v860_v12 = vadd.f32 %v859_v8, %v858_v4 }
  0xea   :  { %v371_v15 = vadd.f32 %v860_v12, %v301_v11 }
 0x105   :  { %v893_v5 = vpop.f32.mrf.mxu0 }
 0x107   :  { %v894_v9 = vpop.f32.mrf.mxu0 }
 0x108   :  { %v928_v10 = vpop.f32.mrf.mxu1  ;;  %v895_v13 = vadd.f32 %v894_v9, %v893_v5 }
 0x10a   :  { %v929_v14 = vpop.f32.mrf.mxu1  ;;  %v441_v48 = vadd.f32 %v895_v13, %v371_v15 }
 0x10b   :  { %v930_v16 = vadd.f32 %v929_v14, %v928_v10 }
 0x10d   :  { %v511_v17 = vadd.f32 %v930_v16, %v441_v48 }
 0x126   :  { %v580_v18 = vpop.f32.mrf.mxu0 }
 0x127   :  { %v581_v20 = vadd.f32 %v580_v18, %v511_v17 }
 0x128   :  { %v1016_v21 = vpop.f32.mrf.mxu0 }
 0x129   :  { %v584_v22 = vmax.f32 %v581_v20, 0.0 }
 0x12b   :  { %1050 = vmatmul.mubr.f32.vlgmr.msra.gmra.mxu1 %v584_v22 }
 0x1eb   :  { %v674_v27 = vpop.f32.mrf.mxu1 }
 0x1ec   :  { %v675_v28 = vadd.f32 %v789_v26, %v674_v27 }
 0x1ed   :  { %v1051_v29 = vpop.f32.mrf.mxu1 }
 0x1ee   :  { %v678_v30 = vmax.f32 %v675_v28, 0.0 }
 0x1f0   :  { %1085 = vmatmul.mubr.f32.vlgmr.msra.gmra.mxu0 %v678_v30 }
 0x2b0   :  { %v768_v19 = vpop.f32.mrf.mxu0 }
 0x2b1   :  { %v769_v32 = vadd.f32 %v790_v31, %v768_v19 }
 0x2b2   :  { %v1086_v33 = vpop.f32.mrf.mxu0 }
 0x2b3   :  { %772 = vst [vmem:[#allocation2] sm:$0x3] %v769_v32 }
 0x2b4   :  { %1104 = shalt.err (!%p1101_p4)
}
 0x2b5   :  { %782 = dma.vmem_to_hbm [thread:$0]  %s780_s12, 32, %s1775_s7, [#allocation3]  }
 0x2b6   :  { %1113 = dma.done.wait [#allocation3], 32  }
 0x2b7   :  { %1114 = vsyncadd [#allocation3], 4294967264 }
 0x2b8   :  { %786 = vsyncpa [#allocation3], 1 }

</bundles_post_ra>
